<compile_context>
chip_gen: v5e
topology: v5e:2x2
jax: 0.10.0
libtpu: 0.0.40
codegen_flags: <defaults>
</compile_context>

<pallas_src>
import jax
import jax.numpy as jnp
from jax import lax
from jax.experimental import pallas as pl
from jax.experimental.pallas import tpu as pltpu

LANE_BLOCK = 128


def _dwconv3x3_kernel(x_ref, top_ref, bot_ref, w_ref, b_ref, o_ref):
    # x_ref  : (TH, W, CB) input strip (image rows [i*TH, i*TH + TH))
    # top_ref: (1, W, CB)  image row i*TH - 1 (clamped; zeroed when i == 0)
    # bot_ref: (1, W, CB)  image row i*TH + TH (clamped; zeroed when i == last)
    # w_ref  : (9, CB)     depthwise taps, row k = 3*dh + dw
    # b_ref  : (1, CB)     bias
    # o_ref  : (TH, W, CB) output strip
    TH, W, CB = o_ref.shape
    f32 = jnp.float32
    strip = pl.program_id(1)
    last_strip = pl.num_programs(1) - 1

    # Taps / bias stay one (1, CB) row each; multiplies/adds broadcast along
    # the sublane axis, so there are no (W, CB) weight slabs to spill.
    wr = [w_ref[k:k + 1, :].astype(f32) for k in range(9)]   # 9 x (1, CB)
    bias_row = b_ref[...].astype(f32)                        # (1, CB)

    # Column-border masks (W on the sublane axis, CB on the lane axis).
    col = lax.broadcasted_iota(jnp.int32, (W, CB), 0)
    not_first_col = col > 0
    not_last_col = col < W - 1

    # Row halo: zero it outside the top/bottom image border.
    top_row = top_ref[0].astype(f32) * jnp.where(strip == 0, 0.0, 1.0)
    bot_row = bot_ref[0].astype(f32) * jnp.where(strip == last_strip, 0.0, 1.0)

    def in_row(j):
        # Input row j of this strip, j in [-1, TH] (static Python index).
        if j == -1:
            return top_row
        if j == TH:
            return bot_row
        return x_ref[j].astype(f32)

    def col_taps(row):
        # (x[w-1], x[w], x[w+1]) with zero fill at the left/right border.
        # Aligned XLU rolls + VPU select; no unaligned sublane slices.
        left = jnp.where(not_first_col, pltpu.roll(row, shift=1, axis=0), 0.0)
        right = jnp.where(not_last_col, pltpu.roll(row, shift=W - 1, axis=0), 0.0)
        return left, row, right

    # Sliding window over input rows: each row is cast / rolled / masked
    # exactly once; its taps are reused by the <=3 output rows that touch it.
    window = [col_taps(in_row(-1)), col_taps(in_row(0)), col_taps(in_row(1))]
    for h in range(TH):
        acc = None
        for dh in range(3):
            taps = window[dh]
            for dw in range(3):
                term = taps[dw] * wr[3 * dh + dw]
                acc = term if acc is None else acc + term
        o_ref[h] = (acc + bias_row).astype(o_ref.dtype)
        if h + 1 < TH:
            window = [window[1], window[2], col_taps(in_row(h + 2))]


def _pick_tiles(H, W, Cp, itemsize):
    """Choose (TH, Hp, CB): strip height, (maybe padded) image height, channel block."""
    # Channel block: fold several 128-lane blocks per step while keeping one
    # (W, CB) f32 row slab <= 32 KiB so the 9-slab sliding window stays close
    # to the 256 KiB vreg file.
    CB = LANE_BLOCK
    for cand in (512, 384, 256):
        if Cp % cand == 0 and W * cand * 4 <= 32 * 1024:
            CB = cand
            break

    # Strip height: largest block whose main input tile stays <= ~1.5 MiB, so
    # (in + out + 2 halo rows) x 2 double-buffers fits comfortably inside the
    # 32 MiB default scoped VMEM limit (v7x-safe), while amortizing per-step
    # overhead and the 2/TH halo re-read.
    budget = 1536 * 1024
    max_th = max(1, min(H, budget // (W * CB * itemsize)))
    div = 1
    for t in range(max_th, 0, -1):
        if H % t == 0:
            div = t
            break
    if div >= min(8, max_th):
        return div, H, CB
    # Awkward / ragged H: pad with zero rows (zero rows reproduce the conv's
    # own zero 'same' padding, so valid rows are unaffected) instead of
    # silently blowing the block up to the whole image.
    Hp = -(-H // max_th) * max_th
    return max_th, Hp, CB


def dwconv(x, H, W, weight_hwc, bias):
    """Depthwise 3x3 'same' conv with bias.

    x: (B, N, C) with N == H*W (row-major tokens).
    weight_hwc: (3, 3, C) — PyTorch Conv2d weight (C, 1, 3, 3) permuted to (3, 3, C),
                i.e. weight_hwc[dh, dw, c] == torch_weight[c, 0, dh, dw].
    bias: (C,)
    """
    B, N, C = x.shape
    assert N == H * W, "N must equal H * W"
    assert weight_hwc.shape == (3, 3, C), "weight must be the (C,1,3,3) conv weight permuted to (3,3,C)"
    assert bias.shape == (C,)

    # Lane-dense channels: pad C up to a multiple of 128 (no-op if already).
    Cp = -(-C // LANE_BLOCK) * LANE_BLOCK
    if Cp != C:
        x = jnp.pad(x, ((0, 0), (0, 0), (0, Cp - C)))
        weight_hwc = jnp.pad(weight_hwc, ((0, 0), (0, 0), (0, Cp - C)))
        bias = jnp.pad(bias, ((0, Cp - C),))

    x_img = x.reshape(B, H, W, Cp)          # NHWC, free reshape
    itemsize = x_img.dtype.itemsize
    TH, Hp, CB = _pick_tiles(H, W, Cp, itemsize)
    if Hp != H:
        x_img = jnp.pad(x_img, ((0, 0), (0, Hp - H), (0, 0), (0, 0)))

    w9 = weight_hwc.reshape(9, Cp)          # row k = 3*dh + dw
    b2 = bias.reshape(1, Cp)

    nH = Hp // TH
    nC = Cp // CB

    def x_main(b, i, c):
        return (b, i, 0, c)

    def x_top(b, i, c):   # row above the strip, clamped into range
        return (b, jnp.maximum(i * TH - 1, 0), 0, c)

    def x_bot(b, i, c):   # row below the strip, clamped into range
        return (b, jnp.minimum((i + 1) * TH, Hp - 1), 0, c)

    cost = pl.CostEstimate(
        flops=2 * 9 * B * Hp * W * Cp,
        transcendentals=0,
        bytes_accessed=int(2 * B * Hp * W * Cp * itemsize          # image in + out
                           + 2 * B * nH * W * Cp * itemsize        # halo rows
                           + B * nH * nC * 10 * CB * itemsize),    # taps + bias
    )

    out = pl.pallas_call(
        _dwconv3x3_kernel,
        out_shape=jax.ShapeDtypeStruct((B, Hp, W, Cp), x.dtype),
        grid=(B, nH, nC),
        in_specs=[
            pl.BlockSpec((None, TH, W, CB), x_main),
            pl.BlockSpec((None, 1, W, CB), x_top),
            pl.BlockSpec((None, 1, W, CB), x_bot),
            pl.BlockSpec((9, CB), lambda b, i, c: (0, c)),
            pl.BlockSpec((1, CB), lambda b, i, c: (0, c)),
        ],
        out_specs=pl.BlockSpec((None, TH, W, CB), x_main),
        compiler_params=pltpu.CompilerParams(
            dimension_semantics=("parallel", "parallel", "parallel")),
        cost_estimate=cost,
    )(x_img, x_img, x_img, w9, b2)

    if Hp != H:
        out = out[:, :H]
    out = out.reshape(B, N, Cp)
    if Cp != C:
        out = out[..., :C]
    return out


def _reference(x, H, W, weight_hwc, bias):
    """Pure-JAX reference (depthwise conv via lax.conv_general_dilated)."""
    B, N, C = x.shape
    x_img = x.reshape(B, H, W, C)
    rhs = weight_hwc.reshape(3, 3, 1, C)  # HWIO with I=1, feature_group_count=C
    y = lax.conv_general_dilated(
        x_img, rhs, window_strides=(1, 1), padding="SAME",
        dimension_numbers=("NHWC", "HWIO", "NHWC"),
        feature_group_count=C,
    )
    return (y + bias.reshape(1, 1, 1, C)).reshape(B, N, C)


def _run_case(key, B, H, W, C):
    kx, kw, kb = jax.random.split(key, 3)
    N = H * W
    x = jax.random.normal(kx, (B, N, C), dtype=jnp.float32)
    # nn.Conv2d(dim, dim, 3, groups=dim) weight is (C, 1, 3, 3); kept as (3, 3, C).
    weight_hwc = jax.random.normal(kw, (3, 3, C), dtype=jnp.float32) * 0.1
    bias = jax.random.normal(kb, (C,), dtype=jnp.float32) * 0.1

    out = jax.block_until_ready(dwconv(x, H, W, weight_hwc, bias))
    ref = _reference(x, H, W, weight_hwc, bias)

    assert out.shape == (B, N, C)
    assert jnp.allclose(out, ref, atol=1e-4, rtol=1e-4), f"mismatch vs reference ({B},{H},{W},{C})"


if __name__ == "__main__":
    key = jax.random.PRNGKey(0)
    k1, k2 = jax.random.split(key)

    # Lane-dense case (C % 128 == 0): whole image in one strip per (batch, C-block).
    _run_case(k1, B=2, H=16, W=16, C=128)
    # Channel-padding case (C not a multiple of 128).
    _run_case(k2, B=1, H=12, W=16, C=96)

    print("KERNEL_OK")
</pallas_src>

<mosaic_0001>
module attributes {stable_mosaic.version = 11 : i64} {
  func.func @_dwconv3x3_kernel(%arg0: i32, %arg1: i32, %arg2: i32, %arg3: memref<1x16x16x128xf32, #tpu.memory_space<vmem>>, %arg4: memref<1x1x16x128xf32, #tpu.memory_space<vmem>>, %arg5: memref<1x1x16x128xf32, #tpu.memory_space<vmem>>, %arg6: memref<9x128xf32, #tpu.memory_space<vmem>>, %arg7: memref<1x128xf32, #tpu.memory_space<vmem>>, %arg8: memref<1x16x16x128xf32, #tpu.memory_space<vmem>>) attributes {dimension_semantics = [#tpu.dimension_semantics<parallel>, #tpu.dimension_semantics<parallel>, #tpu.dimension_semantics<parallel>], iteration_bounds = array<i64: 2, 1, 1>, scalar_prefetch = 0 : i64, scratch_operands = 0 : i64, tpu.core_type = #tpu.core_type<tc>, window_params = [{transform_indices = @transform_0, window_bounds = array<i64: 1, 16, 16, 128>}, {transform_indices = @transform_1, window_bounds = array<i64: 1, 1, 16, 128>}, {transform_indices = @transform_2, window_bounds = array<i64: 1, 1, 16, 128>}, {transform_indices = @transform_3, window_bounds = array<i64: 9, 128>}, {transform_indices = @transform_4, window_bounds = array<i64: 1, 128>}, {transform_indices = @transform_5, window_bounds = array<i64: 1, 16, 16, 128>}]} {
    %c0 = arith.constant 0 : index
    %c0_0 = arith.constant 0 : index
    %0 = vector.load %arg6[%c0, %c0_0] : memref<9x128xf32, #tpu.memory_space<vmem>>, vector<1x128xf32>
    %c1 = arith.constant 1 : index
    %c0_1 = arith.constant 0 : index
    %1 = vector.load %arg6[%c1, %c0_1] : memref<9x128xf32, #tpu.memory_space<vmem>>, vector<1x128xf32>
    %c2 = arith.constant 2 : index
    %c0_2 = arith.constant 0 : index
    %2 = vector.load %arg6[%c2, %c0_2] : memref<9x128xf32, #tpu.memory_space<vmem>>, vector<1x128xf32>
    %c3 = arith.constant 3 : index
    %c0_3 = arith.constant 0 : index
    %3 = vector.load %arg6[%c3, %c0_3] : memref<9x128xf32, #tpu.memory_space<vmem>>, vector<1x128xf32>
    %c4 = arith.constant 4 : index
    %c0_4 = arith.constant 0 : index
    %4 = vector.load %arg6[%c4, %c0_4] : memref<9x128xf32, #tpu.memory_space<vmem>>, vector<1x128xf32>
    %c5 = arith.constant 5 : index
    %c0_5 = arith.constant 0 : index
    %5 = vector.load %arg6[%c5, %c0_5] : memref<9x128xf32, #tpu.memory_space<vmem>>, vector<1x128xf32>
    %c6 = arith.constant 6 : index
    %c0_6 = arith.constant 0 : index
    %6 = vector.load %arg6[%c6, %c0_6] : memref<9x128xf32, #tpu.memory_space<vmem>>, vector<1x128xf32>
    %c7 = arith.constant 7 : index
    %c0_7 = arith.constant 0 : index
    %7 = vector.load %arg6[%c7, %c0_7] : memref<9x128xf32, #tpu.memory_space<vmem>>, vector<1x128xf32>
    %c8 = arith.constant 8 : index
    %c0_8 = arith.constant 0 : index
    %8 = vector.load %arg6[%c8, %c0_8] : memref<9x128xf32, #tpu.memory_space<vmem>>, vector<1x128xf32>
    %c0_9 = arith.constant 0 : index
    %c0_10 = arith.constant 0 : index
    %9 = vector.load %arg7[%c0_9, %c0_10] : memref<1x128xf32, #tpu.memory_space<vmem>>, vector<1x128xf32>
    %10 = tpu.iota {dimensions = array<i32: 0>} : vector<16x128xi32>
    %c0_i32 = arith.constant 0 : i32
    %11 = vector.broadcast %c0_i32 : i32 to vector<16x128xi32>
    %12 = arith.cmpi sgt, %10, %11 : vector<16x128xi32>
    %c15_i32 = arith.constant 15 : i32
    %13 = vector.broadcast %c15_i32 : i32 to vector<16x128xi32>
    %14 = arith.cmpi slt, %10, %13 : vector<16x128xi32>
    %c0_11 = arith.constant 0 : index
    %c0_12 = arith.constant 0 : index
    %c0_13 = arith.constant 0 : index
    %c0_14 = arith.constant 0 : index
    %15 = vector.load %arg4[%c0_11, %c0_12, %c0_13, %c0_14] : memref<1x1x16x128xf32, #tpu.memory_space<vmem>>, vector<1x1x16x128xf32>
    %16 = vector.shape_cast %15 : vector<1x1x16x128xf32> to vector<16x128xf32>
    %c0_i32_15 = arith.constant 0 : i32
    %17 = arith.cmpi eq, %arg1, %c0_i32_15 : i32
    %cst = arith.constant 0.000000e+00 : f32
    %cst_16 = arith.constant 1.000000e+00 : f32
    %18 = arith.select %17, %cst, %cst_16 : f32
    %19 = vector.broadcast %18 : f32 to vector<16x128xf32>
    %20 = arith.mulf %16, %19 : vector<16x128xf32>
    %c0_17 = arith.constant 0 : index
    %c0_18 = arith.constant 0 : index
    %c0_19 = arith.constant 0 : index
    %c0_20 = arith.constant 0 : index
    %21 = vector.load %arg5[%c0_17, %c0_18, %c0_19, %c0_20] : memref<1x1x16x128xf32, #tpu.memory_space<vmem>>, vector<1x1x16x128xf32>
    %22 = vector.shape_cast %21 : vector<1x1x16x128xf32> to vector<16x128xf32>
    %c0_i32_21 = arith.constant 0 : i32
    %23 = arith.cmpi eq, %arg1, %c0_i32_21 : i32
    %cst_22 = arith.constant 0.000000e+00 : f32
    %cst_23 = arith.constant 1.000000e+00 : f32
    %24 = arith.select %23, %cst_22, %cst_23 : f32
    %25 = vector.broadcast %24 : f32 to vector<16x128xf32>
    %26 = arith.mulf %22, %25 : vector<16x128xf32>
    %c1_i32 = arith.constant 1 : i32
    %27 = tpu.dynamic_rotate %20 by %c1_i32 dim 0 : vector<16x128xf32>, i32 -> vector<16x128xf32>
    %cst_24 = arith.constant 0.000000e+00 : f32
    %28 = vector.broadcast %cst_24 : f32 to vector<16x128xf32>
    %29 = arith.select %12, %27, %28 : vector<16x128xi1>, vector<16x128xf32>
    %c15_i32_25 = arith.constant 15 : i32
    %30 = tpu.dynamic_rotate %20 by %c15_i32_25 dim 0 : vector<16x128xf32>, i32 -> vector<16x128xf32>
    %cst_26 = arith.constant 0.000000e+00 : f32
    %31 = vector.broadcast %cst_26 : f32 to vector<16x128xf32>
    %32 = arith.select %14, %30, %31 : vector<16x128xi1>, vector<16x128xf32>
    %c0_27 = arith.constant 0 : index
    %c0_28 = arith.constant 0 : index
    %c0_29 = arith.constant 0 : index
    %c0_30 = arith.constant 0 : index
    %33 = vector.load %arg3[%c0_27, %c0_28, %c0_29, %c0_30] : memref<1x16x16x128xf32, #tpu.memory_space<vmem>>, vector<1x1x16x128xf32>
    %34 = vector.shape_cast %33 : vector<1x1x16x128xf32> to vector<16x128xf32>
    %c1_i32_31 = arith.constant 1 : i32
    %35 = tpu.dynamic_rotate %34 by %c1_i32_31 dim 0 : vector<16x128xf32>, i32 -> vector<16x128xf32>
    %cst_32 = arith.constant 0.000000e+00 : f32
    %36 = vector.broadcast %cst_32 : f32 to vector<16x128xf32>
    %37 = arith.select %12, %35, %36 : vector<16x128xi1>, vector<16x128xf32>
    %c15_i32_33 = arith.constant 15 : i32
    %38 = tpu.dynamic_rotate %34 by %c15_i32_33 dim 0 : vector<16x128xf32>, i32 -> vector<16x128xf32>
    %cst_34 = arith.constant 0.000000e+00 : f32
    %39 = vector.broadcast %cst_34 : f32 to vector<16x128xf32>
    %40 = arith.select %14, %38, %39 : vector<16x128xi1>, vector<16x128xf32>
    %c0_35 = arith.constant 0 : index
    %c1_36 = arith.constant 1 : index
    %c0_37 = arith.constant 0 : index
    %c0_38 = arith.constant 0 : index
    %41 = vector.load %arg3[%c0_35, %c1_36, %c0_37, %c0_38] : memref<1x16x16x128xf32, #tpu.memory_space<vmem>>, vector<1x1x16x128xf32>
    %42 = vector.shape_cast %41 : vector<1x1x16x128xf32> to vector<16x128xf32>
    %c1_i32_39 = arith.constant 1 : i32
    %43 = tpu.dynamic_rotate %42 by %c1_i32_39 dim 0 : vector<16x128xf32>, i32 -> vector<16x128xf32>
    %cst_40 = arith.constant 0.000000e+00 : f32
    %44 = vector.broadcast %cst_40 : f32 to vector<16x128xf32>
    %45 = arith.select %12, %43, %44 : vector<16x128xi1>, vector<16x128xf32>
    %c15_i32_41 = arith.constant 15 : i32
    %46 = tpu.dynamic_rotate %42 by %c15_i32_41 dim 0 : vector<16x128xf32>, i32 -> vector<16x128xf32>
    %cst_42 = arith.constant 0.000000e+00 : f32
    %47 = vector.broadcast %cst_42 : f32 to vector<16x128xf32>
    %48 = arith.select %14, %46, %47 : vector<16x128xi1>, vector<16x128xf32>
    %49 = vector.broadcast %0 : vector<1x128xf32> to vector<16x128xf32>
    %50 = arith.mulf %29, %49 : vector<16x128xf32>
    %51 = vector.broadcast %1 : vector<1x128xf32> to vector<16x128xf32>
    %52 = arith.mulf %20, %51 : vector<16x128xf32>
    %53 = arith.addf %50, %52 : vector<16x128xf32>
    %54 = vector.broadcast %2 : vector<1x128xf32> to vector<16x128xf32>
    %55 = arith.mulf %32, %54 : vector<16x128xf32>
    %56 = arith.addf %53, %55 : vector<16x128xf32>
    %57 = vector.broadcast %3 : vector<1x128xf32> to vector<16x128xf32>
    %58 = arith.mulf %37, %57 : vector<16x128xf32>
    %59 = arith.addf %56, %58 : vector<16x128xf32>
    %60 = vector.broadcast %4 : vector<1x128xf32> to vector<16x128xf32>
    %61 = arith.mulf %34, %60 : vector<16x128xf32>
    %62 = arith.addf %59, %61 : vector<16x128xf32>
    %63 = vector.broadcast %5 : vector<1x128xf32> to vector<16x128xf32>
    %64 = arith.mulf %40, %63 : vector<16x128xf32>
    %65 = arith.addf %62, %64 : vector<16x128xf32>
    %66 = vector.broadcast %6 : vector<1x128xf32> to vector<16x128xf32>
    %67 = arith.mulf %45, %66 : vector<16x128xf32>
    %68 = arith.addf %65, %67 : vector<16x128xf32>
    %69 = vector.broadcast %7 : vector<1x128xf32> to vector<16x128xf32>
    %70 = arith.mulf %42, %69 : vector<16x128xf32>
    %71 = arith.addf %68, %70 : vector<16x128xf32>
    %72 = vector.broadcast %8 : vector<1x128xf32> to vector<16x128xf32>
    %73 = arith.mulf %48, %72 : vector<16x128xf32>
    %74 = arith.addf %71, %73 : vector<16x128xf32>
    %75 = vector.broadcast %9 : vector<1x128xf32> to vector<16x128xf32>
    %76 = arith.addf %74, %75 : vector<16x128xf32>
    %c0_43 = arith.constant 0 : index
    %c0_44 = arith.constant 0 : index
    %c0_45 = arith.constant 0 : index
    %c0_46 = arith.constant 0 : index
    %77 = vector.load %arg8[%c0_43, %c0_44, %c0_45, %c0_46] : memref<1x16x16x128xf32, #tpu.memory_space<vmem>>, vector<1x1x16x128xf32>
    %78 = vector.shape_cast %77 : vector<1x1x16x128xf32> to vector<16x128xf32>
    %79 = vector.shape_cast %76 : vector<16x128xf32> to vector<1x1x16x128xf32>
    tpu.vector_store %arg8[%c0_43, %c0_44, %c0_45, %c0_46], %79 {strides = array<i32>} : memref<1x16x16x128xf32, #tpu.memory_space<vmem>>, vector<1x1x16x128xf32>,
    %c0_47 = arith.constant 0 : index
    %c2_48 = arith.constant 2 : index
    %c0_49 = arith.constant 0 : index
    %c0_50 = arith.constant 0 : index
    %80 = vector.load %arg3[%c0_47, %c2_48, %c0_49, %c0_50] : memref<1x16x16x128xf32, #tpu.memory_space<vmem>>, vector<1x1x16x128xf32>
    %81 = vector.shape_cast %80 : vector<1x1x16x128xf32> to vector<16x128xf32>
    %c1_i32_51 = arith.constant 1 : i32
    %82 = tpu.dynamic_rotate %81 by %c1_i32_51 dim 0 : vector<16x128xf32>, i32 -> vector<16x128xf32>
    %cst_52 = arith.constant 0.000000e+00 : f32
    %83 = vector.broadcast %cst_52 : f32 to vector<16x128xf32>
    %84 = arith.select %12, %82, %83 : vector<16x128xi1>, vector<16x128xf32>
    %c15_i32_53 = arith.constant 15 : i32
    %85 = tpu.dynamic_rotate %81 by %c15_i32_53 dim 0 : vector<16x128xf32>, i32 -> vector<16x128xf32>
    %cst_54 = arith.constant 0.000000e+00 : f32
    %86 = vector.broadcast %cst_54 : f32 to vector<16x128xf32>
    %87 = arith.select %14, %85, %86 : vector<16x128xi1>, vector<16x128xf32>
    %88 = vector.broadcast %0 : vector<1x128xf32> to vector<16x128xf32>
    %89 = arith.mulf %37, %88 : vector<16x128xf32>
    %90 = vector.broadcast %1 : vector<1x128xf32> to vector<16x128xf32>
    %91 = arith.mulf %34, %90 : vector<16x128xf32>
    %92 = arith.addf %89, %91 : vector<16x128xf32>
    %93 = vector.broadcast %2 : vector<1x128xf32> to vector<16x128xf32>
    %94 = arith.mulf %40, %93 : vector<16x128xf32>
    %95 = arith.addf %92, %94 : vector<16x128xf32>
    %96 = vector.broadcast %3 : vector<1x128xf32> to vector<16x128xf32>
    %97 = arith.mulf %45, %96 : vector<16x128xf32>
    %98 = arith.addf %95, %97 : vector<16x128xf32>
    %99 = vector.broadcast %4 : vector<1x128xf32> to vector<16x128xf32>
    %100 = arith.mulf %42, %99 : vector<16x128xf32>
    %101 = arith.addf %98, %100 : vector<16x128xf32>
    %102 = vector.broadcast %5 : vector<1x128xf32> to vector<16x128xf32>
    %103 = arith.mulf %48, %102 : vector<16x128xf32>
    %104 = arith.addf %101, %103 : vector<16x128xf32>
    %105 = vector.broadcast %6 : vector<1x128xf32> to vector<16x128xf32>
    %106 = arith.mulf %84, %105 : vector<16x128xf32>
    %107 = arith.addf %104, %106 : vector<16x128xf32>
    %108 = vector.broadcast %7 : vector<1x128xf32> to vector<16x128xf32>
    %109 = arith.mulf %81, %108 : vector<16x128xf32>
    %110 = arith.addf %107, %109 : vector<16x128xf32>
    %111 = vector.broadcast %8 : vector<1x128xf32> to vector<16x128xf32>
    %112 = arith.mulf %87, %111 : vector<16x128xf32>
    %113 = arith.addf %110, %112 : vector<16x128xf32>
    %114 = vector.broadcast %9 : vector<1x128xf32> to vector<16x128xf32>
    %115 = arith.addf %113, %114 : vector<16x128xf32>
    %c0_55 = arith.constant 0 : index
    %c1_56 = arith.constant 1 : index
    %c0_57 = arith.constant 0 : index
    %c0_58 = arith.constant 0 : index
    %116 = vector.load %arg8[%c0_55, %c1_56, %c0_57, %c0_58] : memref<1x16x16x128xf32, #tpu.memory_space<vmem>>, vector<1x1x16x128xf32>
    %117 = vector.shape_cast %116 : vector<1x1x16x128xf32> to vector<16x128xf32>
    %118 = vector.shape_cast %115 : vector<16x128xf32> to vector<1x1x16x128xf32>
    tpu.vector_store %arg8[%c0_55, %c1_56, %c0_57, %c0_58], %118 {strides = array<i32>} : memref<1x16x16x128xf32, #tpu.memory_space<vmem>>, vector<1x1x16x128xf32>,
    %c0_59 = arith.constant 0 : index
    %c3_60 = arith.constant 3 : index
    %c0_61 = arith.constant 0 : index
    %c0_62 = arith.constant 0 : index
    %119 = vector.load %arg3[%c0_59, %c3_60, %c0_61, %c0_62] : memref<1x16x16x128xf32, #tpu.memory_space<vmem>>, vector<1x1x16x128xf32>
    %120 = vector.shape_cast %119 : vector<1x1x16x128xf32> to vector<16x128xf32>
    %c1_i32_63 = arith.constant 1 : i32
    %121 = tpu.dynamic_rotate %120 by %c1_i32_63 dim 0 : vector<16x128xf32>, i32 -> vector<16x128xf32>
    %cst_64 = arith.constant 0.000000e+00 : f32
    %122 = vector.broadcast %cst_64 : f32 to vector<16x128xf32>
    %123 = arith.select %12, %121, %122 : vector<16x128xi1>, vector<16x128xf32>
    %c15_i32_65 = arith.constant 15 : i32
    %124 = tpu.dynamic_rotate %120 by %c15_i32_65 dim 0 : vector<16x128xf32>, i32 -> vector<16x128xf32>
    %cst_66 = arith.constant 0.000000e+00 : f32
    %125 = vector.broadcast %cst_66 : f32 to vector<16x128xf32>
    %126 = arith.select %14, %124, %125 : vector<16x128xi1>, vector<16x128xf32>
    %127 = vector.broadcast %0 : vector<1x128xf32> to vector<16x128xf32>
    %128 = arith.mulf %45, %127 : vector<16x128xf32>
    %129 = vector.broadcast %1 : vector<1x128xf32> to vector<16x128xf32>
    %130 = arith.mulf %42, %129 : vector<16x128xf32>
    %131 = arith.addf %128, %130 : vector<16x128xf32>
    %132 = vector.broadcast %2 : vector<1x128xf32> to vector<16x128xf32>
    %133 = arith.mulf %48, %132 : vector<16x128xf32>
    %134 = arith.addf %131, %133 : vector<16x128xf32>
    %135 = vector.broadcast %3 : vector<1x128xf32> to vector<16x128xf32>
    %136 = arith.mulf %84, %135 : vector<16x128xf32>
    %137 = arith.addf %134, %136 : vector<16x128xf32>
    %138 = vector.broadcast %4 : vector<1x128xf32> to vector<16x128xf32>
    %139 = arith.mulf %81, %138 : vector<16x128xf32>
    %140 = arith.addf %137, %139 : vector<16x128xf32>
    %141 = vector.broadcast %5 : vector<1x128xf32> to vector<16x128xf32>
    %142 = arith.mulf %87, %141 : vector<16x128xf32>
    %143 = arith.addf %140, %142 : vector<16x128xf32>
    %144 = vector.broadcast %6 : vector<1x128xf32> to vector<16x128xf32>
    %145 = arith.mulf %123, %144 : vector<16x128xf32>
    %146 = arith.addf %143, %145 : vector<16x128xf32>
    %147 = vector.broadcast %7 : vector<1x128xf32> to vector<16x128xf32>
    %148 = arith.mulf %120, %147 : vector<16x128xf32>
    %149 = arith.addf %146, %148 : vector<16x128xf32>
    %150 = vector.broadcast %8 : vector<1x128xf32> to vector<16x128xf32>
    %151 = arith.mulf %126, %150 : vector<16x128xf32>
    %152 = arith.addf %149, %151 : vector<16x128xf32>
    %153 = vector.broadcast %9 : vector<1x128xf32> to vector<16x128xf32>
    %154 = arith.addf %152, %153 : vector<16x128xf32>
    %c0_67 = arith.constant 0 : index
    %c2_68 = arith.constant 2 : index
    %c0_69 = arith.constant 0 : index
    %c0_70 = arith.constant 0 : index
    %155 = vector.load %arg8[%c0_67, %c2_68, %c0_69, %c0_70] : memref<1x16x16x128xf32, #tpu.memory_space<vmem>>, vector<1x1x16x128xf32>
    %156 = vector.shape_cast %155 : vector<1x1x16x128xf32> to vector<16x128xf32>
    %157 = vector.shape_cast %154 : vector<16x128xf32> to vector<1x1x16x128xf32>
    tpu.vector_store %arg8[%c0_67, %c2_68, %c0_69, %c0_70], %157 {strides = array<i32>} : memref<1x16x16x128xf32, #tpu.memory_space<vmem>>, vector<1x1x16x128xf32>,
    %c0_71 = arith.constant 0 : index
    %c4_72 = arith.constant 4 : index
    %c0_73 = arith.constant 0 : index
    %c0_74 = arith.constant 0 : index
    %158 = vector.load %arg3[%c0_71, %c4_72, %c0_73, %c0_74] : memref<1x16x16x128xf32, #tpu.memory_space<vmem>>, vector<1x1x16x128xf32>
    %159 = vector.shape_cast %158 : vector<1x1x16x128xf32> to vector<16x128xf32>
    %c1_i32_75 = arith.constant 1 : i32
    %160 = tpu.dynamic_rotate %159 by %c1_i32_75 dim 0 : vector<16x128xf32>, i32 -> vector<16x128xf32>
    %cst_76 = arith.constant 0.000000e+00 : f32
    %161 = vector.broadcast %cst_76 : f32 to vector<16x128xf32>
    %162 = arith.select %12, %160, %161 : vector<16x128xi1>, vector<16x128xf32>
    %c15_i32_77 = arith.constant 15 : i32
    %163 = tpu.dynamic_rotate %159 by %c15_i32_77 dim 0 : vector<16x128xf32>, i32 -> vector<16x128xf32>
    %cst_78 = arith.constant 0.000000e+00 : f32
    %164 = vector.broadcast %cst_78 : f32 to vector<16x128xf32>
    %165 = arith.select %14, %163, %164 : vector<16x128xi1>, vector<16x128xf32>
    %166 = vector.broadcast %0 : vector<1x128xf32> to vector<16x128xf32>
    %167 = arith.mulf %84, %166 : vector<16x128xf32>
    %168 = vector.broadcast %1 : vector<1x128xf32> to vector<16x128xf32>
    %169 = arith.mulf %81, %168 : vector<16x128xf32>
    %170 = arith.addf %167, %169 : vector<16x128xf32>
    %171 = vector.broadcast %2 : vector<1x128xf32> to vector<16x128xf32>
    %172 = arith.mulf %87, %171 : vector<16x128xf32>
    %173 = arith.addf %170, %172 : vector<16x128xf32>
    %174 = vector.broadcast %3 : vector<1x128xf32> to vector<16x128xf32>
    %175 = arith.mulf %123, %174 : vector<16x128xf32>
    %176 = arith.addf %173, %175 : vector<16x128xf32>
    %177 = vector.broadcast %4 : vector<1x128xf32> to vector<16x128xf32>
    %178 = arith.mulf %120, %177 : vector<16x128xf32>
    %179 = arith.addf %176, %178 : vector<16x128xf32>
    %180 = vector.broadcast %5 : vector<1x128xf32> to vector<16x128xf32>
    %181 = arith.mulf %126, %180 : vector<16x128xf32>
    %182 = arith.addf %179, %181 : vector<16x128xf32>
    %183 = vector.broadcast %6 : vector<1x128xf32> to vector<16x128xf32>
    %184 = arith.mulf %162, %183 : vector<16x128xf32>
    %185 = arith.addf %182, %184 : vector<16x128xf32>
    %186 = vector.broadcast %7 : vector<1x128xf32> to vector<16x128xf32>
    %187 = arith.mulf %159, %186 : vector<16x128xf32>
    %188 = arith.addf %185, %187 : vector<16x128xf32>
    %189 = vector.broadcast %8 : vector<1x128xf32> to vector<16x128xf32>
    %190 = arith.mulf %165, %189 : vector<16x128xf32>
    %191 = arith.addf %188, %190 : vector<16x128xf32>
    %192 = vector.broadcast %9 : vector<1x128xf32> to vector<16x128xf32>
    %193 = arith.addf %191, %192 : vector<16x128xf32>
    %c0_79 = arith.constant 0 : index
    %c3_80 = arith.constant 3 : index
    %c0_81 = arith.constant 0 : index
    %c0_82 = arith.constant 0 : index
    %194 = vector.load %arg8[%c0_79, %c3_80, %c0_81, %c0_82] : memref<1x16x16x128xf32, #tpu.memory_space<vmem>>, vector<1x1x16x128xf32>
    %195 = vector.shape_cast %194 : vector<1x1x16x128xf32> to vector<16x128xf32>
    %196 = vector.shape_cast %193 : vector<16x128xf32> to vector<1x1x16x128xf32>
    tpu.vector_store %arg8[%c0_79, %c3_80, %c0_81, %c0_82], %196 {strides = array<i32>} : memref<1x16x16x128xf32, #tpu.memory_space<vmem>>, vector<1x1x16x128xf32>,
    %c0_83 = arith.constant 0 : index
    %c5_84 = arith.constant 5 : index
    %c0_85 = arith.constant 0 : index
    %c0_86 = arith.constant 0 : index
    %197 = vector.load %arg3[%c0_83, %c5_84, %c0_85, %c0_86] : memref<1x16x16x128xf32, #tpu.memory_space<vmem>>, vector<1x1x16x128xf32>
    %198 = vector.shape_cast %197 : vector<1x1x16x128xf32> to vector<16x128xf32>
    %c1_i32_87 = arith.constant 1 : i32
    %199 = tpu.dynamic_rotate %198 by %c1_i32_87 dim 0 : vector<16x128xf32>, i32 -> vector<16x128xf32>
    %cst_88 = arith.constant 0.000000e+00 : f32
    %200 = vector.broadcast %cst_88 : f32 to vector<16x128xf32>
    %201 = arith.select %12, %199, %200 : vector<16x128xi1>, vector<16x128xf32>
    %c15_i32_89 = arith.constant 15 : i32
    %202 = tpu.dynamic_rotate %198 by %c15_i32_89 dim 0 : vector<16x128xf32>, i32 -> vector<16x128xf32>
    %cst_90 = arith.constant 0.000000e+00 : f32
    %203 = vector.broadcast %cst_90 : f32 to vector<16x128xf32>
    %204 = arith.select %14, %202, %203 : vector<16x128xi1>, vector<16x128xf32>
    %205 = vector.broadcast %0 : vector<1x128xf32> to vector<16x128xf32>
    %206 = arith.mulf %123, %205 : vector<16x128xf32>
    %207 = vector.broadcast %1 : vector<1x128xf32> to vector<16x128xf32>
    %208 = arith.mulf %120, %207 : vector<16x128xf32>
    %209 = arith.addf %206, %208 : vector<16x128xf32>
    %210 = vector.broadcast %2 : vector<1x128xf32> to vector<16x128xf32>
    %211 = arith.mulf %126, %210 : vector<16x128xf32>
    %212 = arith.addf %209, %211 : vector<16x128xf32>
    %213 = vector.broadcast %3 : vector<1x128xf32> to vector<16x128xf32>
    %214 = arith.mulf %162, %213 : vector<16x128xf32>
    %215 = arith.addf %212, %214 : vector<16x128xf32>
    %216 = vector.broadcast %4 : vector<1x128xf32> to vector<16x128xf32>
    %217 = arith.mulf %159, %216 : vector<16x128xf32>
    %218 = arith.addf %215, %217 : vector<16x128xf32>
    %219 = vector.broadcast %5 : vector<1x128xf32> to vector<16x128xf32>
    %220 = arith.mulf %165, %219 : vector<16x128xf32>
    %221 = arith.addf %218, %220 : vector<16x128xf32>
    %222 = vector.broadcast %6 : vector<1x128xf32> to vector<16x128xf32>
    %223 = arith.mulf %201, %222 : vector<16x128xf32>
    %224 = arith.addf %221, %223 : vector<16x128xf32>
    %225 = vector.broadcast %7 : vector<1x128xf32> to vector<16x128xf32>
    %226 = arith.mulf %198, %225 : vector<16x128xf32>
    %227 = arith.addf %224, %226 : vector<16x128xf32>
    %228 = vector.broadcast %8 : vector<1x128xf32> to vector<16x128xf32>
    %229 = arith.mulf %204, %228 : vector<16x128xf32>
    %230 = arith.addf %227, %229 : vector<16x128xf32>
    %231 = vector.broadcast %9 : vector<1x128xf32> to vector<16x128xf32>
    %232 = arith.addf %230, %231 : vector<16x128xf32>
    %c0_91 = arith.constant 0 : index
    %c4_92 = arith.constant 4 : index
    %c0_93 = arith.constant 0 : index
    %c0_94 = arith.constant 0 : index
    %233 = vector.load %arg8[%c0_91, %c4_92, %c0_93, %c0_94] : memref<1x16x16x128xf32, #tpu.memory_space<vmem>>, vector<1x1x16x128xf32>
    %234 = vector.shape_cast %233 : vector<1x1x16x128xf32> to vector<16x128xf32>
    %235 = vector.shape_cast %232 : vector<16x128xf32> to vector<1x1x16x128xf32>
    tpu.vector_store %arg8[%c0_91, %c4_92, %c0_93, %c0_94], %235 {strides = array<i32>} : memref<1x16x16x128xf32, #tpu.memory_space<vmem>>, vector<1x1x16x128xf32>,
    %c0_95 = arith.constant 0 : index
    %c6_96 = arith.constant 6 : index
    %c0_97 = arith.constant 0 : index
    %c0_98 = arith.constant 0 : index
    %236 = vector.load %arg3[%c0_95, %c6_96, %c0_97, %c0_98] : memref<1x16x16x128xf32, #tpu.memory_space<vmem>>, vector<1x1x16x128xf32>
    %237 = vector.shape_cast %236 : vector<1x1x16x128xf32> to vector<16x128xf32>
    %c1_i32_99 = arith.constant 1 : i32
    %238 = tpu.dynamic_rotate %237 by %c1_i32_99 dim 0 : vector<16x128xf32>, i32 -> vector<16x128xf32>
    %cst_100 = arith.constant 0.000000e+00 : f32
    %239 = vector.broadcast %cst_100 : f32 to vector<16x128xf32>
    %240 = arith.select %12, %238, %239 : vector<16x128xi1>, vector<16x128xf32>
    %c15_i32_101 = arith.constant 15 : i32
    %241 = tpu.dynamic_rotate %237 by %c15_i32_101 dim 0 : vector<16x128xf32>, i32 -> vector<16x128xf32>
    %cst_102 = arith.constant 0.000000e+00 : f32
    %242 = vector.broadcast %cst_102 : f32 to vector<16x128xf32>
    %243 = arith.select %14, %241, %242 : vector<16x128xi1>, vector<16x128xf32>
    %244 = vector.broadcast %0 : vector<1x128xf32> to vector<16x128xf32>
    %245 = arith.mulf %162, %244 : vector<16x128xf32>
    %246 = vector.broadcast %1 : vector<1x128xf32> to vector<16x128xf32>
    %247 = arith.mulf %159, %246 : vector<16x128xf32>
    %248 = arith.addf %245, %247 : vector<16x128xf32>
    %249 = vector.broadcast %2 : vector<1x128xf32> to vector<16x128xf32>
    %250 = arith.mulf %165, %249 : vector<16x128xf32>
    %251 = arith.addf %248, %250 : vector<16x128xf32>
    %252 = vector.broadcast %3 : vector<1x128xf32> to vector<16x128xf32>
    %253 = arith.mulf %201, %252 : vector<16x128xf32>
    %254 = arith.addf %251, %253 : vector<16x128xf32>
    %255 = vector.broadcast %4 : vector<1x128xf32> to vector<16x128xf32>
    %256 = arith.mulf %198, %255 : vector<16x128xf32>
    %257 = arith.addf %254, %256 : vector<16x128xf32>
    %258 = vector.broadcast %5 : vector<1x128xf32> to vector<16x128xf32>
    %259 = arith.mulf %204, %258 : vector<16x128xf32>
    %260 = arith.addf %257, %259 : vector<16x128xf32>
    %261 = vector.broadcast %6 : vector<1x128xf32> to vector<16x128xf32>
    %262 = arith.mulf %240, %261 : vector<16x128xf32>
    %263 = arith.addf %260, %262 : vector<16x128xf32>
    %264 = vector.broadcast %7 : vector<1x128xf32> to vector<16x128xf32>
    %265 = arith.mulf %237, %264 : vector<16x128xf32>
    %266 = arith.addf %263, %265 : vector<16x128xf32>
    %267 = vector.broadcast %8 : vector<1x128xf32> to vector<16x128xf32>
    %268 = arith.mulf %243, %267 : vector<16x128xf32>
    %269 = arith.addf %266, %268 : vector<16x128xf32>
    %270 = vector.broadcast %9 : vector<1x128xf32> to vector<16x128xf32>
    %271 = arith.addf %269, %270 : vector<16x128xf32>
    %c0_103 = arith.constant 0 : index
    %c5_104 = arith.constant 5 : index
    %c0_105 = arith.constant 0 : index
    %c0_106 = arith.constant 0 : index
    %272 = vector.load %arg8[%c0_103, %c5_104, %c0_105, %c0_106] : memref<1x16x16x128xf32, #tpu.memory_space<vmem>>, vector<1x1x16x128xf32>
    %273 = vector.shape_cast %272 : vector<1x1x16x128xf32> to vector<16x128xf32>
    %274 = vector.shape_cast %271 : vector<16x128xf32> to vector<1x1x16x128xf32>
    tpu.vector_store %arg8[%c0_103, %c5_104, %c0_105, %c0_106], %274 {strides = array<i32>} : memref<1x16x16x128xf32, #tpu.memory_space<vmem>>, vector<1x1x16x128xf32>,
    %c0_107 = arith.constant 0 : index
    %c7_108 = arith.constant 7 : index
    %c0_109 = arith.constant 0 : index
    %c0_110 = arith.constant 0 : index
    %275 = vector.load %arg3[%c0_107, %c7_108, %c0_109, %c0_110] : memref<1x16x16x128xf32, #tpu.memory_space<vmem>>, vector<1x1x16x128xf32>
    %276 = vector.shape_cast %275 : vector<1x1x16x128xf32> to vector<16x128xf32>
    %c1_i32_111 = arith.constant 1 : i32
    %277 = tpu.dynamic_rotate %276 by %c1_i32_111 dim 0 : vector<16x128xf32>, i32 -> vector<16x128xf32>
    %cst_112 = arith.constant 0.000000e+00 : f32
    %278 = vector.broadcast %cst_112 : f32 to vector<16x128xf32>
    %279 = arith.select %12, %277, %278 : vector<16x128xi1>, vector<16x128xf32>
    %c15_i32_113 = arith.constant 15 : i32
    %280 = tpu.dynamic_rotate %276 by %c15_i32_113 dim 0 : vector<16x128xf32>, i32 -> vector<16x128xf32>
    %cst_114 = arith.constant 0.000000e+00 : f32
    %281 = vector.broadcast %cst_114 : f32 to vector<16x128xf32>
    %282 = arith.select %14, %280, %281 : vector<16x128xi1>, vector<16x128xf32>
    %283 = vector.broadcast %0 : vector<1x128xf32> to vector<16x128xf32>
    %284 = arith.mulf %201, %283 : vector<16x128xf32>
    %285 = vector.broadcast %1 : vector<1x128xf32> to vector<16x128xf32>
    %286 = arith.mulf %198, %285 : vector<16x128xf32>
    %287 = arith.addf %284, %286 : vector<16x128xf32>
    %288 = vector.broadcast %2 : vector<1x128xf32> to vector<16x128xf32>
    %289 = arith.mulf %204, %288 : vector<16x128xf32>
    %290 = arith.addf %287, %289 : vector<16x128xf32>
    %291 = vector.broadcast %3 : vector<1x128xf32> to vector<16x128xf32>
    %292 = arith.mulf %240, %291 : vector<16x128xf32>
    %293 = arith.addf %290, %292 : vector<16x128xf32>
    %294 = vector.broadcast %4 : vector<1x128xf32> to vector<16x128xf32>
    %295 = arith.mulf %237, %294 : vector<16x128xf32>
    %296 = arith.addf %293, %295 : vector<16x128xf32>
    %297 = vector.broadcast %5 : vector<1x128xf32> to vector<16x128xf32>
    %298 = arith.mulf %243, %297 : vector<16x128xf32>
    %299 = arith.addf %296, %298 : vector<16x128xf32>
    %300 = vector.broadcast %6 : vector<1x128xf32> to vector<16x128xf32>
    %301 = arith.mulf %279, %300 : vector<16x128xf32>
    %302 = arith.addf %299, %301 : vector<16x128xf32>
    %303 = vector.broadcast %7 : vector<1x128xf32> to vector<16x128xf32>
    %304 = arith.mulf %276, %303 : vector<16x128xf32>
    %305 = arith.addf %302, %304 : vector<16x128xf32>
    %306 = vector.broadcast %8 : vector<1x128xf32> to vector<16x128xf32>
    %307 = arith.mulf %282, %306 : vector<16x128xf32>
    %308 = arith.addf %305, %307 : vector<16x128xf32>
    %309 = vector.broadcast %9 : vector<1x128xf32> to vector<16x128xf32>
    %310 = arith.addf %308, %309 : vector<16x128xf32>
    %c0_115 = arith.constant 0 : index
    %c6_116 = arith.constant 6 : index
    %c0_117 = arith.constant 0 : index
    %c0_118 = arith.constant 0 : index
    %311 = vector.load %arg8[%c0_115, %c6_116, %c0_117, %c0_118] : memref<1x16x16x128xf32, #tpu.memory_space<vmem>>, vector<1x1x16x128xf32>
    %312 = vector.shape_cast %311 : vector<1x1x16x128xf32> to vector<16x128xf32>
    %313 = vector.shape_cast %310 : vector<16x128xf32> to vector<1x1x16x128xf32>
    tpu.vector_store %arg8[%c0_115, %c6_116, %c0_117, %c0_118], %313 {strides = array<i32>} : memref<1x16x16x128xf32, #tpu.memory_space<vmem>>, vector<1x1x16x128xf32>,
    %c0_119 = arith.constant 0 : index
    %c8_120 = arith.constant 8 : index
    %c0_121 = arith.constant 0 : index
    %c0_122 = arith.constant 0 : index
    %314 = vector.load %arg3[%c0_119, %c8_120, %c0_121, %c0_122] : memref<1x16x16x128xf32, #tpu.memory_space<vmem>>, vector<1x1x16x128xf32>
    %315 = vector.shape_cast %314 : vector<1x1x16x128xf32> to vector<16x128xf32>
    %c1_i32_123 = arith.constant 1 : i32
    %316 = tpu.dynamic_rotate %315 by %c1_i32_123 dim 0 : vector<16x128xf32>, i32 -> vector<16x128xf32>
    %cst_124 = arith.constant 0.000000e+00 : f32
    %317 = vector.broadcast %cst_124 : f32 to vector<16x128xf32>
    %318 = arith.select %12, %316, %317 : vector<16x128xi1>, vector<16x128xf32>
    %c15_i32_125 = arith.constant 15 : i32
    %319 = tpu.dynamic_rotate %315 by %c15_i32_125 dim 0 : vector<16x128xf32>, i32 -> vector<16x128xf32>
    %cst_126 = arith.constant 0.000000e+00 : f32
    %320 = vector.broadcast %cst_126 : f32 to vector<16x128xf32>
    %321 = arith.select %14, %319, %320 : vector<16x128xi1>, vector<16x128xf32>
    %322 = vector.broadcast %0 : vector<1x128xf32> to vector<16x128xf32>
    %323 = arith.mulf %240, %322 : vector<16x128xf32>
    %324 = vector.broadcast %1 : vector<1x128xf32> to vector<16x128xf32>
    %325 = arith.mulf %237, %324 : vector<16x128xf32>
    %326 = arith.addf %323, %325 : vector<16x128xf32>
    %327 = vector.broadcast %2 : vector<1x128xf32> to vector<16x128xf32>
    %328 = arith.mulf %243, %327 : vector<16x128xf32>
    %329 = arith.addf %326, %328 : vector<16x128xf32>
    %330 = vector.broadcast %3 : vector<1x128xf32> to vector<16x128xf32>
    %331 = arith.mulf %279, %330 : vector<16x128xf32>
    %332 = arith.addf %329, %331 : vector<16x128xf32>
    %333 = vector.broadcast %4 : vector<1x128xf32> to vector<16x128xf32>
    %334 = arith.mulf %276, %333 : vector<16x128xf32>
    %335 = arith.addf %332, %334 : vector<16x128xf32>
    %336 = vector.broadcast %5 : vector<1x128xf32> to vector<16x128xf32>
    %337 = arith.mulf %282, %336 : vector<16x128xf32>
    %338 = arith.addf %335, %337 : vector<16x128xf32>
    %339 = vector.broadcast %6 : vector<1x128xf32> to vector<16x128xf32>
    %340 = arith.mulf %318, %339 : vector<16x128xf32>
    %341 = arith.addf %338, %340 : vector<16x128xf32>
    %342 = vector.broadcast %7 : vector<1x128xf32> to vector<16x128xf32>
    %343 = arith.mulf %315, %342 : vector<16x128xf32>
    %344 = arith.addf %341, %343 : vector<16x128xf32>
    %345 = vector.broadcast %8 : vector<1x128xf32> to vector<16x128xf32>
    %346 = arith.mulf %321, %345 : vector<16x128xf32>
    %347 = arith.addf %344, %346 : vector<16x128xf32>
    %348 = vector.broadcast %9 : vector<1x128xf32> to vector<16x128xf32>
    %349 = arith.addf %347, %348 : vector<16x128xf32>
    %c0_127 = arith.constant 0 : index
    %c7_128 = arith.constant 7 : index
    %c0_129 = arith.constant 0 : index
    %c0_130 = arith.constant 0 : index
    %350 = vector.load %arg8[%c0_127, %c7_128, %c0_129, %c0_130] : memref<1x16x16x128xf32, #tpu.memory_space<vmem>>, vector<1x1x16x128xf32>
    %351 = vector.shape_cast %350 : vector<1x1x16x128xf32> to vector<16x128xf32>
    %352 = vector.shape_cast %349 : vector<16x128xf32> to vector<1x1x16x128xf32>
    tpu.vector_store %arg8[%c0_127, %c7_128, %c0_129, %c0_130], %352 {strides = array<i32>} : memref<1x16x16x128xf32, #tpu.memory_space<vmem>>, vector<1x1x16x128xf32>,
    %c0_131 = arith.constant 0 : index
    %c9 = arith.constant 9 : index
    %c0_132 = arith.constant 0 : index
    %c0_133 = arith.constant 0 : index
    %353 = vector.load %arg3[%c0_131, %c9, %c0_132, %c0_133] : memref<1x16x16x128xf32, #tpu.memory_space<vmem>>, vector<1x1x16x128xf32>
    %354 = vector.shape_cast %353 : vector<1x1x16x128xf32> to vector<16x128xf32>
    %c1_i32_134 = arith.constant 1 : i32
    %355 = tpu.dynamic_rotate %354 by %c1_i32_134 dim 0 : vector<16x128xf32>, i32 -> vector<16x128xf32>
    %cst_135 = arith.constant 0.000000e+00 : f32
    %356 = vector.broadcast %cst_135 : f32 to vector<16x128xf32>
    %357 = arith.select %12, %355, %356 : vector<16x128xi1>, vector<16x128xf32>
    %c15_i32_136 = arith.constant 15 : i32
    %358 = tpu.dynamic_rotate %354 by %c15_i32_136 dim 0 : vector<16x128xf32>, i32 -> vector<16x128xf32>
    %cst_137 = arith.constant 0.000000e+00 : f32
    %359 = vector.broadcast %cst_137 : f32 to vector<16x128xf32>
    %360 = arith.select %14, %358, %359 : vector<16x128xi1>, vector<16x128xf32>
    %361 = vector.broadcast %0 : vector<1x128xf32> to vector<16x128xf32>
    %362 = arith.mulf %279, %361 : vector<16x128xf32>
    %363 = vector.broadcast %1 : vector<1x128xf32> to vector<16x128xf32>
    %364 = arith.mulf %276, %363 : vector<16x128xf32>
    %365 = arith.addf %362, %364 : vector<16x128xf32>
    %366 = vector.broadcast %2 : vector<1x128xf32> to vector<16x128xf32>
    %367 = arith.mulf %282, %366 : vector<16x128xf32>
    %368 = arith.addf %365, %367 : vector<16x128xf32>
    %369 = vector.broadcast %3 : vector<1x128xf32> to vector<16x128xf32>
    %370 = arith.mulf %318, %369 : vector<16x128xf32>
    %371 = arith.addf %368, %370 : vector<16x128xf32>
    %372 = vector.broadcast %4 : vector<1x128xf32> to vector<16x128xf32>
    %373 = arith.mulf %315, %372 : vector<16x128xf32>
    %374 = arith.addf %371, %373 : vector<16x128xf32>
    %375 = vector.broadcast %5 : vector<1x128xf32> to vector<16x128xf32>
    %376 = arith.mulf %321, %375 : vector<16x128xf32>
    %377 = arith.addf %374, %376 : vector<16x128xf32>
    %378 = vector.broadcast %6 : vector<1x128xf32> to vector<16x128xf32>
    %379 = arith.mulf %357, %378 : vector<16x128xf32>
    %380 = arith.addf %377, %379 : vector<16x128xf32>
    %381 = vector.broadcast %7 : vector<1x128xf32> to vector<16x128xf32>
    %382 = arith.mulf %354, %381 : vector<16x128xf32>
    %383 = arith.addf %380, %382 : vector<16x128xf32>
    %384 = vector.broadcast %8 : vector<1x128xf32> to vector<16x128xf32>
    %385 = arith.mulf %360, %384 : vector<16x128xf32>
    %386 = arith.addf %383, %385 : vector<16x128xf32>
    %387 = vector.broadcast %9 : vector<1x128xf32> to vector<16x128xf32>
    %388 = arith.addf %386, %387 : vector<16x128xf32>
    %c0_138 = arith.constant 0 : index
    %c8_139 = arith.constant 8 : index
    %c0_140 = arith.constant 0 : index
    %c0_141 = arith.constant 0 : index
    %389 = vector.load %arg8[%c0_138, %c8_139, %c0_140, %c0_141] : memref<1x16x16x128xf32, #tpu.memory_space<vmem>>, vector<1x1x16x128xf32>
    %390 = vector.shape_cast %389 : vector<1x1x16x128xf32> to vector<16x128xf32>
    %391 = vector.shape_cast %388 : vector<16x128xf32> to vector<1x1x16x128xf32>
    tpu.vector_store %arg8[%c0_138, %c8_139, %c0_140, %c0_141], %391 {strides = array<i32>} : memref<1x16x16x128xf32, #tpu.memory_space<vmem>>, vector<1x1x16x128xf32>,
    %c0_142 = arith.constant 0 : index
    %c10 = arith.constant 10 : index
    %c0_143 = arith.constant 0 : index
    %c0_144 = arith.constant 0 : index
    %392 = vector.load %arg3[%c0_142, %c10, %c0_143, %c0_144] : memref<1x16x16x128xf32, #tpu.memory_space<vmem>>, vector<1x1x16x128xf32>
    %393 = vector.shape_cast %392 : vector<1x1x16x128xf32> to vector<16x128xf32>
    %c1_i32_145 = arith.constant 1 : i32
    %394 = tpu.dynamic_rotate %393 by %c1_i32_145 dim 0 : vector<16x128xf32>, i32 -> vector<16x128xf32>
    %cst_146 = arith.constant 0.000000e+00 : f32
    %395 = vector.broadcast %cst_146 : f32 to vector<16x128xf32>
    %396 = arith.select %12, %394, %395 : vector<16x128xi1>, vector<16x128xf32>
    %c15_i32_147 = arith.constant 15 : i32
    %397 = tpu.dynamic_rotate %393 by %c15_i32_147 dim 0 : vector<16x128xf32>, i32 -> vector<16x128xf32>
    %cst_148 = arith.constant 0.000000e+00 : f32
    %398 = vector.broadcast %cst_148 : f32 to vector<16x128xf32>
    %399 = arith.select %14, %397, %398 : vector<16x128xi1>, vector<16x128xf32>
    %400 = vector.broadcast %0 : vector<1x128xf32> to vector<16x128xf32>
    %401 = arith.mulf %318, %400 : vector<16x128xf32>
    %402 = vector.broadcast %1 : vector<1x128xf32> to vector<16x128xf32>
    %403 = arith.mulf %315, %402 : vector<16x128xf32>
    %404 = arith.addf %401, %403 : vector<16x128xf32>
    %405 = vector.broadcast %2 : vector<1x128xf32> to vector<16x128xf32>
    %406 = arith.mulf %321, %405 : vector<16x128xf32>
    %407 = arith.addf %404, %406 : vector<16x128xf32>
    %408 = vector.broadcast %3 : vector<1x128xf32> to vector<16x128xf32>
    %409 = arith.mulf %357, %408 : vector<16x128xf32>
    %410 = arith.addf %407, %409 : vector<16x128xf32>
    %411 = vector.broadcast %4 : vector<1x128xf32> to vector<16x128xf32>
    %412 = arith.mulf %354, %411 : vector<16x128xf32>
    %413 = arith.addf %410, %412 : vector<16x128xf32>
    %414 = vector.broadcast %5 : vector<1x128xf32> to vector<16x128xf32>
    %415 = arith.mulf %360, %414 : vector<16x128xf32>
    %416 = arith.addf %413, %415 : vector<16x128xf32>
    %417 = vector.broadcast %6 : vector<1x128xf32> to vector<16x128xf32>
    %418 = arith.mulf %396, %417 : vector<16x128xf32>
    %419 = arith.addf %416, %418 : vector<16x128xf32>
    %420 = vector.broadcast %7 : vector<1x128xf32> to vector<16x128xf32>
    %421 = arith.mulf %393, %420 : vector<16x128xf32>
    %422 = arith.addf %419, %421 : vector<16x128xf32>
    %423 = vector.broadcast %8 : vector<1x128xf32> to vector<16x128xf32>
    %424 = arith.mulf %399, %423 : vector<16x128xf32>
    %425 = arith.addf %422, %424 : vector<16x128xf32>
    %426 = vector.broadcast %9 : vector<1x128xf32> to vector<16x128xf32>
    %427 = arith.addf %425, %426 : vector<16x128xf32>
    %c0_149 = arith.constant 0 : index
    %c9_150 = arith.constant 9 : index
    %c0_151 = arith.constant 0 : index
    %c0_152 = arith.constant 0 : index
    %428 = vector.load %arg8[%c0_149, %c9_150, %c0_151, %c0_152] : memref<1x16x16x128xf32, #tpu.memory_space<vmem>>, vector<1x1x16x128xf32>
    %429 = vector.shape_cast %428 : vector<1x1x16x128xf32> to vector<16x128xf32>
    %430 = vector.shape_cast %427 : vector<16x128xf32> to vector<1x1x16x128xf32>
    tpu.vector_store %arg8[%c0_149, %c9_150, %c0_151, %c0_152], %430 {strides = array<i32>} : memref<1x16x16x128xf32, #tpu.memory_space<vmem>>, vector<1x1x16x128xf32>,
    %c0_153 = arith.constant 0 : index
    %c11 = arith.constant 11 : index
    %c0_154 = arith.constant 0 : index
    %c0_155 = arith.constant 0 : index
    %431 = vector.load %arg3[%c0_153, %c11, %c0_154, %c0_155] : memref<1x16x16x128xf32, #tpu.memory_space<vmem>>, vector<1x1x16x128xf32>
    %432 = vector.shape_cast %431 : vector<1x1x16x128xf32> to vector<16x128xf32>
    %c1_i32_156 = arith.constant 1 : i32
    %433 = tpu.dynamic_rotate %432 by %c1_i32_156 dim 0 : vector<16x128xf32>, i32 -> vector<16x128xf32>
    %cst_157 = arith.constant 0.000000e+00 : f32
    %434 = vector.broadcast %cst_157 : f32 to vector<16x128xf32>
    %435 = arith.select %12, %433, %434 : vector<16x128xi1>, vector<16x128xf32>
    %c15_i32_158 = arith.constant 15 : i32
    %436 = tpu.dynamic_rotate %432 by %c15_i32_158 dim 0 : vector<16x128xf32>, i32 -> vector<16x128xf32>
    %cst_159 = arith.constant 0.000000e+00 : f32
    %437 = vector.broadcast %cst_159 : f32 to vector<16x128xf32>
    %438 = arith.select %14, %436, %437 : vector<16x128xi1>, vector<16x128xf32>
    %439 = vector.broadcast %0 : vector<1x128xf32> to vector<16x128xf32>
    %440 = arith.mulf %357, %439 : vector<16x128xf32>
    %441 = vector.broadcast %1 : vector<1x128xf32> to vector<16x128xf32>
    %442 = arith.mulf %354, %441 : vector<16x128xf32>
    %443 = arith.addf %440, %442 : vector<16x128xf32>
    %444 = vector.broadcast %2 : vector<1x128xf32> to vector<16x128xf32>
    %445 = arith.mulf %360, %444 : vector<16x128xf32>
    %446 = arith.addf %443, %445 : vector<16x128xf32>
    %447 = vector.broadcast %3 : vector<1x128xf32> to vector<16x128xf32>
    %448 = arith.mulf %396, %447 : vector<16x128xf32>
    %449 = arith.addf %446, %448 : vector<16x128xf32>
    %450 = vector.broadcast %4 : vector<1x128xf32> to vector<16x128xf32>
    %451 = arith.mulf %393, %450 : vector<16x128xf32>
    %452 = arith.addf %449, %451 : vector<16x128xf32>
    %453 = vector.broadcast %5 : vector<1x128xf32> to vector<16x128xf32>
    %454 = arith.mulf %399, %453 : vector<16x128xf32>
    %455 = arith.addf %452, %454 : vector<16x128xf32>
    %456 = vector.broadcast %6 : vector<1x128xf32> to vector<16x128xf32>
    %457 = arith.mulf %435, %456 : vector<16x128xf32>
    %458 = arith.addf %455, %457 : vector<16x128xf32>
    %459 = vector.broadcast %7 : vector<1x128xf32> to vector<16x128xf32>
    %460 = arith.mulf %432, %459 : vector<16x128xf32>
    %461 = arith.addf %458, %460 : vector<16x128xf32>
    %462 = vector.broadcast %8 : vector<1x128xf32> to vector<16x128xf32>
    %463 = arith.mulf %438, %462 : vector<16x128xf32>
    %464 = arith.addf %461, %463 : vector<16x128xf32>
    %465 = vector.broadcast %9 : vector<1x128xf32> to vector<16x128xf32>
    %466 = arith.addf %464, %465 : vector<16x128xf32>
    %c0_160 = arith.constant 0 : index
    %c10_161 = arith.constant 10 : index
    %c0_162 = arith.constant 0 : index
    %c0_163 = arith.constant 0 : index
    %467 = vector.load %arg8[%c0_160, %c10_161, %c0_162, %c0_163] : memref<1x16x16x128xf32, #tpu.memory_space<vmem>>, vector<1x1x16x128xf32>
    %468 = vector.shape_cast %467 : vector<1x1x16x128xf32> to vector<16x128xf32>
    %469 = vector.shape_cast %466 : vector<16x128xf32> to vector<1x1x16x128xf32>
    tpu.vector_store %arg8[%c0_160, %c10_161, %c0_162, %c0_163], %469 {strides = array<i32>} : memref<1x16x16x128xf32, #tpu.memory_space<vmem>>, vector<1x1x16x128xf32>,
    %c0_164 = arith.constant 0 : index
    %c12 = arith.constant 12 : index
    %c0_165 = arith.constant 0 : index
    %c0_166 = arith.constant 0 : index
    %470 = vector.load %arg3[%c0_164, %c12, %c0_165, %c0_166] : memref<1x16x16x128xf32, #tpu.memory_space<vmem>>, vector<1x1x16x128xf32>
    %471 = vector.shape_cast %470 : vector<1x1x16x128xf32> to vector<16x128xf32>
    %c1_i32_167 = arith.constant 1 : i32
    %472 = tpu.dynamic_rotate %471 by %c1_i32_167 dim 0 : vector<16x128xf32>, i32 -> vector<16x128xf32>
    %cst_168 = arith.constant 0.000000e+00 : f32
    %473 = vector.broadcast %cst_168 : f32 to vector<16x128xf32>
    %474 = arith.select %12, %472, %473 : vector<16x128xi1>, vector<16x128xf32>
    %c15_i32_169 = arith.constant 15 : i32
    %475 = tpu.dynamic_rotate %471 by %c15_i32_169 dim 0 : vector<16x128xf32>, i32 -> vector<16x128xf32>
    %cst_170 = arith.constant 0.000000e+00 : f32
    %476 = vector.broadcast %cst_170 : f32 to vector<16x128xf32>
    %477 = arith.select %14, %475, %476 : vector<16x128xi1>, vector<16x128xf32>
    %478 = vector.broadcast %0 : vector<1x128xf32> to vector<16x128xf32>
    %479 = arith.mulf %396, %478 : vector<16x128xf32>
    %480 = vector.broadcast %1 : vector<1x128xf32> to vector<16x128xf32>
    %481 = arith.mulf %393, %480 : vector<16x128xf32>
    %482 = arith.addf %479, %481 : vector<16x128xf32>
    %483 = vector.broadcast %2 : vector<1x128xf32> to vector<16x128xf32>
    %484 = arith.mulf %399, %483 : vector<16x128xf32>
    %485 = arith.addf %482, %484 : vector<16x128xf32>
    %486 = vector.broadcast %3 : vector<1x128xf32> to vector<16x128xf32>
    %487 = arith.mulf %435, %486 : vector<16x128xf32>
    %488 = arith.addf %485, %487 : vector<16x128xf32>
    %489 = vector.broadcast %4 : vector<1x128xf32> to vector<16x128xf32>
    %490 = arith.mulf %432, %489 : vector<16x128xf32>
    %491 = arith.addf %488, %490 : vector<16x128xf32>
    %492 = vector.broadcast %5 : vector<1x128xf32> to vector<16x128xf32>
    %493 = arith.mulf %438, %492 : vector<16x128xf32>
    %494 = arith.addf %491, %493 : vector<16x128xf32>
    %495 = vector.broadcast %6 : vector<1x128xf32> to vector<16x128xf32>
    %496 = arith.mulf %474, %495 : vector<16x128xf32>
    %497 = arith.addf %494, %496 : vector<16x128xf32>
    %498 = vector.broadcast %7 : vector<1x128xf32> to vector<16x128xf32>
    %499 = arith.mulf %471, %498 : vector<16x128xf32>
    %500 = arith.addf %497, %499 : vector<16x128xf32>
    %501 = vector.broadcast %8 : vector<1x128xf32> to vector<16x128xf32>
    %502 = arith.mulf %477, %501 : vector<16x128xf32>
    %503 = arith.addf %500, %502 : vector<16x128xf32>
    %504 = vector.broadcast %9 : vector<1x128xf32> to vector<16x128xf32>
    %505 = arith.addf %503, %504 : vector<16x128xf32>
    %c0_171 = arith.constant 0 : index
    %c11_172 = arith.constant 11 : index
    %c0_173 = arith.constant 0 : index
    %c0_174 = arith.constant 0 : index
    %506 = vector.load %arg8[%c0_171, %c11_172, %c0_173, %c0_174] : memref<1x16x16x128xf32, #tpu.memory_space<vmem>>, vector<1x1x16x128xf32>
    %507 = vector.shape_cast %506 : vector<1x1x16x128xf32> to vector<16x128xf32>
    %508 = vector.shape_cast %505 : vector<16x128xf32> to vector<1x1x16x128xf32>
    tpu.vector_store %arg8[%c0_171, %c11_172, %c0_173, %c0_174], %508 {strides = array<i32>} : memref<1x16x16x128xf32, #tpu.memory_space<vmem>>, vector<1x1x16x128xf32>,
    %c0_175 = arith.constant 0 : index
    %c13 = arith.constant 13 : index
    %c0_176 = arith.constant 0 : index
    %c0_177 = arith.constant 0 : index
    %509 = vector.load %arg3[%c0_175, %c13, %c0_176, %c0_177] : memref<1x16x16x128xf32, #tpu.memory_space<vmem>>, vector<1x1x16x128xf32>
    %510 = vector.shape_cast %509 : vector<1x1x16x128xf32> to vector<16x128xf32>
    %c1_i32_178 = arith.constant 1 : i32
    %511 = tpu.dynamic_rotate %510 by %c1_i32_178 dim 0 : vector<16x128xf32>, i32 -> vector<16x128xf32>
    %cst_179 = arith.constant 0.000000e+00 : f32
    %512 = vector.broadcast %cst_179 : f32 to vector<16x128xf32>
    %513 = arith.select %12, %511, %512 : vector<16x128xi1>, vector<16x128xf32>
    %c15_i32_180 = arith.constant 15 : i32
    %514 = tpu.dynamic_rotate %510 by %c15_i32_180 dim 0 : vector<16x128xf32>, i32 -> vector<16x128xf32>
    %cst_181 = arith.constant 0.000000e+00 : f32
    %515 = vector.broadcast %cst_181 : f32 to vector<16x128xf32>
    %516 = arith.select %14, %514, %515 : vector<16x128xi1>, vector<16x128xf32>
    %517 = vector.broadcast %0 : vector<1x128xf32> to vector<16x128xf32>
    %518 = arith.mulf %435, %517 : vector<16x128xf32>
    %519 = vector.broadcast %1 : vector<1x128xf32> to vector<16x128xf32>
    %520 = arith.mulf %432, %519 : vector<16x128xf32>
    %521 = arith.addf %518, %520 : vector<16x128xf32>
    %522 = vector.broadcast %2 : vector<1x128xf32> to vector<16x128xf32>
    %523 = arith.mulf %438, %522 : vector<16x128xf32>
    %524 = arith.addf %521, %523 : vector<16x128xf32>
    %525 = vector.broadcast %3 : vector<1x128xf32> to vector<16x128xf32>
    %526 = arith.mulf %474, %525 : vector<16x128xf32>
    %527 = arith.addf %524, %526 : vector<16x128xf32>
    %528 = vector.broadcast %4 : vector<1x128xf32> to vector<16x128xf32>
    %529 = arith.mulf %471, %528 : vector<16x128xf32>
    %530 = arith.addf %527, %529 : vector<16x128xf32>
    %531 = vector.broadcast %5 : vector<1x128xf32> to vector<16x128xf32>
    %532 = arith.mulf %477, %531 : vector<16x128xf32>
    %533 = arith.addf %530, %532 : vector<16x128xf32>
    %534 = vector.broadcast %6 : vector<1x128xf32> to vector<16x128xf32>
    %535 = arith.mulf %513, %534 : vector<16x128xf32>
    %536 = arith.addf %533, %535 : vector<16x128xf32>
    %537 = vector.broadcast %7 : vector<1x128xf32> to vector<16x128xf32>
    %538 = arith.mulf %510, %537 : vector<16x128xf32>
    %539 = arith.addf %536, %538 : vector<16x128xf32>
    %540 = vector.broadcast %8 : vector<1x128xf32> to vector<16x128xf32>
    %541 = arith.mulf %516, %540 : vector<16x128xf32>
    %542 = arith.addf %539, %541 : vector<16x128xf32>
    %543 = vector.broadcast %9 : vector<1x128xf32> to vector<16x128xf32>
    %544 = arith.addf %542, %543 : vector<16x128xf32>
    %c0_182 = arith.constant 0 : index
    %c12_183 = arith.constant 12 : index
    %c0_184 = arith.constant 0 : index
    %c0_185 = arith.constant 0 : index
    %545 = vector.load %arg8[%c0_182, %c12_183, %c0_184, %c0_185] : memref<1x16x16x128xf32, #tpu.memory_space<vmem>>, vector<1x1x16x128xf32>
    %546 = vector.shape_cast %545 : vector<1x1x16x128xf32> to vector<16x128xf32>
    %547 = vector.shape_cast %544 : vector<16x128xf32> to vector<1x1x16x128xf32>
    tpu.vector_store %arg8[%c0_182, %c12_183, %c0_184, %c0_185], %547 {strides = array<i32>} : memref<1x16x16x128xf32, #tpu.memory_space<vmem>>, vector<1x1x16x128xf32>,
    %c0_186 = arith.constant 0 : index
    %c14 = arith.constant 14 : index
    %c0_187 = arith.constant 0 : index
    %c0_188 = arith.constant 0 : index
    %548 = vector.load %arg3[%c0_186, %c14, %c0_187, %c0_188] : memref<1x16x16x128xf32, #tpu.memory_space<vmem>>, vector<1x1x16x128xf32>
    %549 = vector.shape_cast %548 : vector<1x1x16x128xf32> to vector<16x128xf32>
    %c1_i32_189 = arith.constant 1 : i32
    %550 = tpu.dynamic_rotate %549 by %c1_i32_189 dim 0 : vector<16x128xf32>, i32 -> vector<16x128xf32>
    %cst_190 = arith.constant 0.000000e+00 : f32
    %551 = vector.broadcast %cst_190 : f32 to vector<16x128xf32>
    %552 = arith.select %12, %550, %551 : vector<16x128xi1>, vector<16x128xf32>
    %c15_i32_191 = arith.constant 15 : i32
    %553 = tpu.dynamic_rotate %549 by %c15_i32_191 dim 0 : vector<16x128xf32>, i32 -> vector<16x128xf32>
    %cst_192 = arith.constant 0.000000e+00 : f32
    %554 = vector.broadcast %cst_192 : f32 to vector<16x128xf32>
    %555 = arith.select %14, %553, %554 : vector<16x128xi1>, vector<16x128xf32>
    %556 = vector.broadcast %0 : vector<1x128xf32> to vector<16x128xf32>
    %557 = arith.mulf %474, %556 : vector<16x128xf32>
    %558 = vector.broadcast %1 : vector<1x128xf32> to vector<16x128xf32>
    %559 = arith.mulf %471, %558 : vector<16x128xf32>
    %560 = arith.addf %557, %559 : vector<16x128xf32>
    %561 = vector.broadcast %2 : vector<1x128xf32> to vector<16x128xf32>
    %562 = arith.mulf %477, %561 : vector<16x128xf32>
    %563 = arith.addf %560, %562 : vector<16x128xf32>
    %564 = vector.broadcast %3 : vector<1x128xf32> to vector<16x128xf32>
    %565 = arith.mulf %513, %564 : vector<16x128xf32>
    %566 = arith.addf %563, %565 : vector<16x128xf32>
    %567 = vector.broadcast %4 : vector<1x128xf32> to vector<16x128xf32>
    %568 = arith.mulf %510, %567 : vector<16x128xf32>
    %569 = arith.addf %566, %568 : vector<16x128xf32>
    %570 = vector.broadcast %5 : vector<1x128xf32> to vector<16x128xf32>
    %571 = arith.mulf %516, %570 : vector<16x128xf32>
    %572 = arith.addf %569, %571 : vector<16x128xf32>
    %573 = vector.broadcast %6 : vector<1x128xf32> to vector<16x128xf32>
    %574 = arith.mulf %552, %573 : vector<16x128xf32>
    %575 = arith.addf %572, %574 : vector<16x128xf32>
    %576 = vector.broadcast %7 : vector<1x128xf32> to vector<16x128xf32>
    %577 = arith.mulf %549, %576 : vector<16x128xf32>
    %578 = arith.addf %575, %577 : vector<16x128xf32>
    %579 = vector.broadcast %8 : vector<1x128xf32> to vector<16x128xf32>
    %580 = arith.mulf %555, %579 : vector<16x128xf32>
    %581 = arith.addf %578, %580 : vector<16x128xf32>
    %582 = vector.broadcast %9 : vector<1x128xf32> to vector<16x128xf32>
    %583 = arith.addf %581, %582 : vector<16x128xf32>
    %c0_193 = arith.constant 0 : index
    %c13_194 = arith.constant 13 : index
    %c0_195 = arith.constant 0 : index
    %c0_196 = arith.constant 0 : index
    %584 = vector.load %arg8[%c0_193, %c13_194, %c0_195, %c0_196] : memref<1x16x16x128xf32, #tpu.memory_space<vmem>>, vector<1x1x16x128xf32>
    %585 = vector.shape_cast %584 : vector<1x1x16x128xf32> to vector<16x128xf32>
    %586 = vector.shape_cast %583 : vector<16x128xf32> to vector<1x1x16x128xf32>
    tpu.vector_store %arg8[%c0_193, %c13_194, %c0_195, %c0_196], %586 {strides = array<i32>} : memref<1x16x16x128xf32, #tpu.memory_space<vmem>>, vector<1x1x16x128xf32>,
    %c0_197 = arith.constant 0 : index
    %c15 = arith.constant 15 : index
    %c0_198 = arith.constant 0 : index
    %c0_199 = arith.constant 0 : index
    %587 = vector.load %arg3[%c0_197, %c15, %c0_198, %c0_199] : memref<1x16x16x128xf32, #tpu.memory_space<vmem>>, vector<1x1x16x128xf32>
    %588 = vector.shape_cast %587 : vector<1x1x16x128xf32> to vector<16x128xf32>
    %c1_i32_200 = arith.constant 1 : i32
    %589 = tpu.dynamic_rotate %588 by %c1_i32_200 dim 0 : vector<16x128xf32>, i32 -> vector<16x128xf32>
    %cst_201 = arith.constant 0.000000e+00 : f32
    %590 = vector.broadcast %cst_201 : f32 to vector<16x128xf32>
    %591 = arith.select %12, %589, %590 : vector<16x128xi1>, vector<16x128xf32>
    %c15_i32_202 = arith.constant 15 : i32
    %592 = tpu.dynamic_rotate %588 by %c15_i32_202 dim 0 : vector<16x128xf32>, i32 -> vector<16x128xf32>
    %cst_203 = arith.constant 0.000000e+00 : f32
    %593 = vector.broadcast %cst_203 : f32 to vector<16x128xf32>
    %594 = arith.select %14, %592, %593 : vector<16x128xi1>, vector<16x128xf32>
    %595 = vector.broadcast %0 : vector<1x128xf32> to vector<16x128xf32>
    %596 = arith.mulf %513, %595 : vector<16x128xf32>
    %597 = vector.broadcast %1 : vector<1x128xf32> to vector<16x128xf32>
    %598 = arith.mulf %510, %597 : vector<16x128xf32>
    %599 = arith.addf %596, %598 : vector<16x128xf32>
    %600 = vector.broadcast %2 : vector<1x128xf32> to vector<16x128xf32>
    %601 = arith.mulf %516, %600 : vector<16x128xf32>
    %602 = arith.addf %599, %601 : vector<16x128xf32>
    %603 = vector.broadcast %3 : vector<1x128xf32> to vector<16x128xf32>
    %604 = arith.mulf %552, %603 : vector<16x128xf32>
    %605 = arith.addf %602, %604 : vector<16x128xf32>
    %606 = vector.broadcast %4 : vector<1x128xf32> to vector<16x128xf32>
    %607 = arith.mulf %549, %606 : vector<16x128xf32>
    %608 = arith.addf %605, %607 : vector<16x128xf32>
    %609 = vector.broadcast %5 : vector<1x128xf32> to vector<16x128xf32>
    %610 = arith.mulf %555, %609 : vector<16x128xf32>
    %611 = arith.addf %608, %610 : vector<16x128xf32>
    %612 = vector.broadcast %6 : vector<1x128xf32> to vector<16x128xf32>
    %613 = arith.mulf %591, %612 : vector<16x128xf32>
    %614 = arith.addf %611, %613 : vector<16x128xf32>
    %615 = vector.broadcast %7 : vector<1x128xf32> to vector<16x128xf32>
    %616 = arith.mulf %588, %615 : vector<16x128xf32>
    %617 = arith.addf %614, %616 : vector<16x128xf32>
    %618 = vector.broadcast %8 : vector<1x128xf32> to vector<16x128xf32>
    %619 = arith.mulf %594, %618 : vector<16x128xf32>
    %620 = arith.addf %617, %619 : vector<16x128xf32>
    %621 = vector.broadcast %9 : vector<1x128xf32> to vector<16x128xf32>
    %622 = arith.addf %620, %621 : vector<16x128xf32>
    %c0_204 = arith.constant 0 : index
    %c14_205 = arith.constant 14 : index
    %c0_206 = arith.constant 0 : index
    %c0_207 = arith.constant 0 : index
    %623 = vector.load %arg8[%c0_204, %c14_205, %c0_206, %c0_207] : memref<1x16x16x128xf32, #tpu.memory_space<vmem>>, vector<1x1x16x128xf32>
    %624 = vector.shape_cast %623 : vector<1x1x16x128xf32> to vector<16x128xf32>
    %625 = vector.shape_cast %622 : vector<16x128xf32> to vector<1x1x16x128xf32>
    tpu.vector_store %arg8[%c0_204, %c14_205, %c0_206, %c0_207], %625 {strides = array<i32>} : memref<1x16x16x128xf32, #tpu.memory_space<vmem>>, vector<1x1x16x128xf32>,
    %c1_i32_208 = arith.constant 1 : i32
    %626 = tpu.dynamic_rotate %26 by %c1_i32_208 dim 0 : vector<16x128xf32>, i32 -> vector<16x128xf32>
    %cst_209 = arith.constant 0.000000e+00 : f32
    %627 = vector.broadcast %cst_209 : f32 to vector<16x128xf32>
    %628 = arith.select %12, %626, %627 : vector<16x128xi1>, vector<16x128xf32>
    %c15_i32_210 = arith.constant 15 : i32
    %629 = tpu.dynamic_rotate %26 by %c15_i32_210 dim 0 : vector<16x128xf32>, i32 -> vector<16x128xf32>
    %cst_211 = arith.constant 0.000000e+00 : f32
    %630 = vector.broadcast %cst_211 : f32 to vector<16x128xf32>
    %631 = arith.select %14, %629, %630 : vector<16x128xi1>, vector<16x128xf32>
    %632 = vector.broadcast %0 : vector<1x128xf32> to vector<16x128xf32>
    %633 = arith.mulf %552, %632 : vector<16x128xf32>
    %634 = vector.broadcast %1 : vector<1x128xf32> to vector<16x128xf32>
    %635 = arith.mulf %549, %634 : vector<16x128xf32>
    %636 = arith.addf %633, %635 : vector<16x128xf32>
    %637 = vector.broadcast %2 : vector<1x128xf32> to vector<16x128xf32>
    %638 = arith.mulf %555, %637 : vector<16x128xf32>
    %639 = arith.addf %636, %638 : vector<16x128xf32>
    %640 = vector.broadcast %3 : vector<1x128xf32> to vector<16x128xf32>
    %641 = arith.mulf %591, %640 : vector<16x128xf32>
    %642 = arith.addf %639, %641 : vector<16x128xf32>
    %643 = vector.broadcast %4 : vector<1x128xf32> to vector<16x128xf32>
    %644 = arith.mulf %588, %643 : vector<16x128xf32>
    %645 = arith.addf %642, %644 : vector<16x128xf32>
    %646 = vector.broadcast %5 : vector<1x128xf32> to vector<16x128xf32>
    %647 = arith.mulf %594, %646 : vector<16x128xf32>
    %648 = arith.addf %645, %647 : vector<16x128xf32>
    %649 = vector.broadcast %6 : vector<1x128xf32> to vector<16x128xf32>
    %650 = arith.mulf %628, %649 : vector<16x128xf32>
    %651 = arith.addf %648, %650 : vector<16x128xf32>
    %652 = vector.broadcast %7 : vector<1x128xf32> to vector<16x128xf32>
    %653 = arith.mulf %26, %652 : vector<16x128xf32>
    %654 = arith.addf %651, %653 : vector<16x128xf32>
    %655 = vector.broadcast %8 : vector<1x128xf32> to vector<16x128xf32>
    %656 = arith.mulf %631, %655 : vector<16x128xf32>
    %657 = arith.addf %654, %656 : vector<16x128xf32>
    %658 = vector.broadcast %9 : vector<1x128xf32> to vector<16x128xf32>
    %659 = arith.addf %657, %658 : vector<16x128xf32>
    %c0_212 = arith.constant 0 : index
    %c15_213 = arith.constant 15 : index
    %c0_214 = arith.constant 0 : index
    %c0_215 = arith.constant 0 : index
    %660 = vector.load %arg8[%c0_212, %c15_213, %c0_214, %c0_215] : memref<1x16x16x128xf32, #tpu.memory_space<vmem>>, vector<1x1x16x128xf32>
    %661 = vector.shape_cast %660 : vector<1x1x16x128xf32> to vector<16x128xf32>
    %662 = vector.shape_cast %659 : vector<16x128xf32> to vector<1x1x16x128xf32>
    tpu.vector_store %arg8[%c0_212, %c15_213, %c0_214, %c0_215], %662 {strides = array<i32>} : memref<1x16x16x128xf32, #tpu.memory_space<vmem>>, vector<1x1x16x128xf32>,
    return
  }
  func.func @transform_0(%arg0: i32, %arg1: i32, %arg2: i32) -> (i32, i32, i32, i32) {
    %c0_i32 = arith.constant 0 : i32
    %c0_i32_0 = arith.constant 0 : i32
    return %arg0, %arg1, %c0_i32, %arg2 : i32, i32, i32, i32
  }
  func.func @transform_1(%arg0: i32, %arg1: i32, %arg2: i32) -> (i32, i32, i32, i32) {
    %c16_i32 = arith.constant 16 : i32
    %0 = arith.muli %arg1, %c16_i32 : i32
    %c1_i32 = arith.constant 1 : i32
    %1 = arith.subi %0, %c1_i32 : i32
    %c0_i32 = arith.constant 0 : i32
    %2 = arith.maxsi %1, %c0_i32 : i32
    %c0_i32_0 = arith.constant 0 : i32
    %c0_i32_1 = arith.constant 0 : i32
    return %arg0, %2, %c0_i32_0, %arg2 : i32, i32, i32, i32
  }
  func.func @transform_2(%arg0: i32, %arg1: i32, %arg2: i32) -> (i32, i32, i32, i32) {
    %c1_i32 = arith.constant 1 : i32
    %0 = arith.addi %arg1, %c1_i32 : i32
    %c16_i32 = arith.constant 16 : i32
    %1 = arith.muli %0, %c16_i32 : i32
    %c15_i32 = arith.constant 15 : i32
    %2 = arith.minsi %1, %c15_i32 : i32
    %c0_i32 = arith.constant 0 : i32
    %c0_i32_0 = arith.constant 0 : i32
    return %arg0, %2, %c0_i32, %arg2 : i32, i32, i32, i32
  }
  func.func @transform_3(%arg0: i32, %arg1: i32, %arg2: i32) -> (i32, i32) {
    %c0_i32 = arith.constant 0 : i32
    %c0_i32_0 = arith.constant 0 : i32
    return %c0_i32, %arg2 : i32, i32
  }
  func.func @transform_4(%arg0: i32, %arg1: i32, %arg2: i32) -> (i32, i32) {
    %c0_i32 = arith.constant 0 : i32
    %c0_i32_0 = arith.constant 0 : i32
    return %c0_i32, %arg2 : i32, i32
  }
  func.func @transform_5(%arg0: i32, %arg1: i32, %arg2: i32) -> (i32, i32, i32, i32) {
    %c0_i32 = arith.constant 0 : i32
    %c0_i32_0 = arith.constant 0 : i32
    return %arg0, %arg1, %c0_i32, %arg2 : i32, i32, i32, i32
  }
}

</mosaic_0001>

<bundles_post_ra>
// kernel: tpu_custom_call.1
= control target key start
LH: loop header
LB: loop body
LE: loop exit
PB: predicated region body
PF: predicated region fallthrough
CT: control target
= control target key end

     0   :  { %s3172_s0 = inlined_call_operand.hbm [shape: f32[2,16,16,128], index: 0, kind: input, shape index: {}]   ;;  %s3173_s1 = inlined_call_operand.hbm [shape: f32[2,16,16,128], index: 1, kind: input, shape index: {}]   ;;  %s3174_s2 = inlined_call_operand.hbm [shape: f32[2,16,16,128], index: 2, kind: input, shape index: {}]   ;;  %s3175_s3 = inlined_call_operand.hbm [shape: f32[9,128], index: 3, kind: input, shape index: {}]   ;;  %s3176_s4 = inlined_call_operand.vmem [shape: f32[1,128], index: 4, kind: input, shape index: {}]   ;;  %s3177_s5 = inlined_call_operand.hbm [shape: f32[2,16,16,128], index: 5, kind: output, shape index: {}]  }
   0x1   :  { %3185 = sst [smem:[#allocation19_spill]] %s3172_s0 }
   0x2   :  { %3186 = sst [smem:[#allocation20_spill]] %s3173_s1 }
   0x3   :  { %3187 = sst [smem:[#allocation21_spill]] %s3175_s3 }
   0x4   :  { %10 = vsyncpa [#allocation3], 0 }
   0x5   :  { %12 = vsyncpa [#allocation3 + $0x1], 0 }
   0x6   :  { %13 = vsyncpa [#allocation6], 0 }
   0x7   :  { %15 = vsyncpa [#allocation6 + $0x1], 0 }
   0x8   :  { %16 = vsyncpa [#allocation9], 0 }
   0x9   :  { %17 = vsyncpa [#allocation4], 0 }
   0xa   :  { %19 = vsyncpa [#allocation4 + $0x1], 0  ;;  %s2004_s18 = smov 0   ;;  %s2006_s19 = smov 0  }
   0xb   :  { %s2008_s20 = smov 0   ;;  %s2010_s21 = smov 0  }
   0xc   :  { %s2012_s22 = smov 0   ;;  %s2014_s23 = smov 0  }
   0xd LB: > { %3188 = sst [smem:[#allocation15_spill]] %s1955_s20  ;;  %s44_s24 = sadd.s32 1, %s1963_s22  ;;  %s1967_s23 = sphi %s2014_s23, %s25_s23   ;;  %s1963_s22 = sphi %s2012_s22, %s3206_s22   ;;  %s1959_s21 = sphi %s2010_s21, %s3205_s21   ;;  %s1955_s20 = sphi %s2008_s20, %s3204_s20   ;;  %s1951_s19 = sphi %s2006_s19, %s3208_s19   ;;  %s1947_s18 = sphi %s2004_s18, %s3207_s18  }
   0xe   : > { %3189 = sst [smem:[#allocation16_spill]] %s1963_s22  ;;  %s55_s25 = sadd.s32 1, %s1955_s20 }
   0xf   : > { %p46_p0 = scmp.ge.s32.totalorder %s44_s24, 2  ;;  %p62_p1 = scmp.ne.s32.totalorder %s1955_s20, %s1951_s19 }
  0x10   : > { %p63_p2 = scmp.eq.s32.totalorder %s1967_s23, 0  ;;  %p1563_p4 = scmp.ge.s32.totalorder %s1967_s23, 2 }
  0x11   : > { %s3210_s24 = smov (%p46_p0, %s44_s24), 0  ;;  %p1681_p6 = scmp.lt.s32.totalorder %s1967_s23, 2 }
  0x12   : > { %3190 = sst [smem:[#allocation17_spill]] %s3210_s24  ;;  %p64_p3 = por %p63_p2, %p62_p1 }
  0x13   : > { %s48_s26 = ssub.s32 %s1963_s22, %s3210_s24  ;;  %s2049_s27 = sand.u32 1, %s1955_s20  }
  0x14   : > { %p53_p5 = scmp.eq.s32.totalorder %s48_s26, 0  ;;  %s2052_s28 = sshll.u32 %s1963_s22, 8 }
  0x15   : > { %p2057_p7 = pnand %p1681_p6, %p64_p3  ;;  %s298_s6 = sand.u32 1, %s1967_s23  }
  0x16   : > { %s2055_s29 = scalar_select %p53_p5, %s1955_s20, %s55_s25  }
  0x17   : > { %s1567_s7 = sshll.u32 %s2049_s27, 4  ;;  %s3193_s1 = sld [smem:[#allocation20_spill]] }
  0x18   : > { %3191 = sst [smem:[#allocation18_spill]] %s2055_s29  ;;  %s302_s11 = scalar_lea.vmem [#allocation5], %s1567_s7 }
  0x19   : > { %s317_s12 = sshll.u32 %s302_s11, 4  ;;  %s2067_s14 = scalar_lea.sflag [#allocation6], %s298_s6  ;;  %s318_s12 = int_to_ptr.vmem [resolvable:$true] %s317_s12 }
  0x1a   : > { %s3178_s15 = smov 128   ;;  %s3180_s16 = smov 8  }
  0x1b   : > { %s2075_s17 = scalar_lea.vmem [#allocation7], %s1567_s7  ;;  %s2079_s26 = sadd.s32 4294967295, %s1967_s23  }
  0x1c   : > { %s1559_s6 = sadd.s32 4294967294, %s1967_s23   ;;  %p68_p8 = scmp.ne.s32.totalorder %s1951_s19, %s1947_s18 }
  0x1d   : > { %s314_s10 = scalar_lea.hbm %s3193_s1, %s2052_s28  ;;  %p69_p9 = scmp.eq.s32.totalorder %s2079_s26, 0 }
  0x1e   : > { %s315_s13 = sshll.u32 %s314_s10, 4  ;;  %p224_p10 = scmp.eq.s32.totalorder %s2079_s26, 1  ;;  %s316_s13 = int_to_ptr.hbm [resolvable:$true] %s315_s13 }
  0x1f   : > { %1672 = dma.hbm_to_vmem [thread:$0]  (!%p2057_p7), %s316_s13, 256, %s318_s12, %s2067_s14, %s3178_s15, %s3178_s15, %s3180_s16  }
  0x20   : > { %p230_p11 = scmp.eq.s32.totalorder %s1559_s6, 1  ;;  %p2088_p12 = por %p69_p9, %p68_p8 }
  0x21   : > { %p1560_p13 = scmp.ge.s32.totalorder %s1967_s23, 1  ;;  %p2096_p0 = por %p224_p10, %p62_p1 }
  0x22   : > { %p2100_p2 = por %p230_p11, %p68_p8  ;;  %p237_p3 = scmp.lt.s32.totalorder %s1967_s23, 3 }
  0x23   : > { %s3197_s3 = sld [smem:[#allocation21_spill]]  ;;  %s1971_s6 = smov [#allocation8]  }
  0x24   : > { %p2108_p5 = pnand %p1560_p13, %p237_p3  ;;  %s252_s25 = sshll.u32 %s1971_s6, 4  ;;  %s253_s25 = int_to_ptr.vmem [resolvable:$true] %s252_s25 }
  0x25   : > { %s1564_s15 = sshll.u32 %s2049_s27, 8  ;;  %s3199_s0 = sld [smem:[#allocation19_spill]] }
  0x26   : > { %p1662_p1 = pneg %p2108_p5  ;;  %s3200_s22 = smov 8  }
  0x27   : > { %s3201_s29 = smov 128   ;;  %s1647_s6 = sadd.s32 240, %s2052_s28 }
  0x28   : > { %p1663_p6 = pnand %p1662_p1, %p69_p9  ;;  %s273_s20 = scalar_lea.sflag [#allocation3], %s2049_s27 }
  0x29   : > { %s250_s12 = sshll.u32 %s3197_s3, 4  ;;  %s276_s3 = scalar_lea.vmem [#allocation2], %s1564_s15  ;;  %s251_s12 = int_to_ptr.hbm [resolvable:$true] %s250_s12 }
  0x2a   : > { %s288_s24 = sshll.u32 %s276_s3, 4  ;;  %s3202_s1 = sshll.u32 %s2075_s17, 4  ;;  %s289_s24 = int_to_ptr.vmem [resolvable:$true] %s288_s24  ;;  %s347_s1 = int_to_ptr.vmem [resolvable:$true] %s3202_s1 }
  0x2b   : > { %s285_s10 = scalar_lea.hbm %s3199_s0, %s2052_s28  ;;  %s343_s15 = scalar_lea.hbm %s3174_s2, %s1647_s6 }
  0x2c   : > { %s286_s11 = sshll.u32 %s285_s10, 4  ;;  %s344_s3 = sshll.u32 %s343_s15, 4  ;;  %s287_s11 = int_to_ptr.hbm [resolvable:$true] %s286_s11  ;;  %s345_s3 = int_to_ptr.hbm [resolvable:$true] %s344_s3 }
  0x2d   : > { %1665 = dma.hbm_to_vmem [thread:$0]  (!%p1663_p6), %s251_s12, 256, %s253_s25, [#allocation9], %s3201_s29, %s3201_s29, %s3200_s22  }
  0x2e   : > { %1669 = dma.hbm_to_vmem [thread:$0]  (!%p2057_p7), %s287_s11, 4096, %s289_s24, %s273_s20, %s3201_s29, %s3201_s29, %s3200_s22  }
  0x2f   : > { %1675 = dma.hbm_to_vmem [thread:$0]  (!%p2057_p7), %s345_s3, 256, %s347_s1, %s2067_s14, %s3201_s29, %s3201_s29, %s3200_s22  }
  0x30   : > { %358 = sbr.rel (%p2108_p5) target bundleno = 263 (0x107), region = 40  ;;  %s2145_s27 = sand.u32 (!%p2108_p5), 1, %s1951_s19  }
  0x31   : > { %s1574_s20 = sshll.u32 (!%p2108_p5), %s2145_s27, 8  ;;  %s361_s0 = scalar_lea.sflag (!%p2108_p5), [#allocation3], %s2145_s27 }
  0x32   : > { %s2151_s24 = scalar_lea.vmem (!%p2108_p5), [#allocation2], %s1574_s20 }
  0x35   : > { %1930 = dma.done.wait (%p2088_p12), %s361_s0, 4096  }
  0x36   : > { %1932 = vsyncadd (%p2088_p12), %s361_s0, 4294963200  ;;  %s370_s22 = sand.u32 1, %s2079_s26   ;;  %s1575_s28 = sshll.u32 %s2145_s27, 4 }
  0x37   : > { %s371_s29 = scalar_lea.sflag [#allocation6], %s370_s22  ;;  %s374_s30 = scalar_lea.vmem [#allocation5], %s1575_s28 }
  0x38   : > { %1934 = dma.done.wait (%p2088_p12), %s371_s29, 512  }
  0x39   : > { %1936 = vsyncadd (%p2088_p12), %s371_s29, 4294966784  ;;  %s2163_s14 = scalar_lea.vmem [#allocation7], %s1575_s28 }
  0x3a   : > { %1938 = dma.done.wait (%p69_p9), [#allocation9], 256  }
  0x3b   : > { %1940 = vsyncadd (%p69_p9), [#allocation9], 4294967040  ;;  %v453_v0 = vlaneseq  ;;  %v460_v3 = vld [vmem:[%s374_s30] sm:$0xff]  ;;  %v461_v4 = vld [vmem:[%s374_s30 + $0x8] sm:$0xff]  ;;  %s2345_s26 = scalar_lea.vmem [#allocation10], %s1574_s20  ;;  %s1648_s13 = sshll.u32 %s1959_s21, 8 }
  0x3c   : > { %v465_v5 = vmul.f32 0.0, %v460_v3  ;;  %v2176_v6 = vmul.f32 0.0, %v461_v4  ;;  %v2180_v7 = vld [vmem:[%s2151_s24] sm:$0xff]  ;;  %v2183_v8 = vld [vmem:[%s2151_s24 + $0x8] sm:$0xff]  ;;  %v2186_v9 = vld [vmem:[%s2151_s24 + $0x10] sm:$0xff]  ;;  %s1387_s21 = scalar_lea.hbm %s3177_s5, %s1648_s13  ;;  %s1388_s6 = sshll.u32 %s2345_s26, 4  ;;  %s1389_s6 = int_to_ptr.vmem [resolvable:$true] %s1388_s6 }
  0x3d   : > { %v2169_v1 = vshrl.u32 %v453_v0, 7  ;;  %v487_v10 = vrot.slane %v2180_v7, 7  ;;  %v488_v11 = vrot.slane %v2183_v8, 7  ;;  %v493_v12 = vrot.slane %v2180_v7, 1  ;;  %v2193_v14 = vld [vmem:[%s2151_s24 + $0x18] sm:$0xff]  ;;  %s1390_s1 = sshll.u32 %s1387_s21, 4  ;;  %s1391_s1 = int_to_ptr.hbm [resolvable:$true] %s1390_s1 }
  0x3e   : > { %v494_v13 = vrot.slane %v2183_v8, 1  ;;  %v471_v15 = vrot.slane %v465_v5, 7  ;;  %v472_v16 = vrot.slane %v2176_v6, 7  ;;  %v478_v17 = vrot.slane %v465_v5, 1  ;;  %v2198_v19 = vld [vmem:[#allocation8] ss:$0 sm:$0xff] }
  0x3f   : > { %v2172_v2 = vadd.s32 8, %v2169_v1  ;;  %vm456_vm0 = vcmp.gt.s32.totalorder %v2169_v1, 0  ;;  %vm473_vm1 = vcmp.lt.s32.totalorder %v2169_v1, 1  ;;  %vm480_vm2 = vcmp.lt.s32.totalorder %v2169_v1, 7  ;;  %v2204_v23 = vld [vmem:[#allocation8 + $0x1] ss:$0 sm:$0xff] }
  0x40   : > { %v479_v18 = vrot.slane %v2176_v6, 1  ;;  %v490_v20 = vsel %vm473_vm1, %v488_v11, %v487_v10  ;;  %v502_v21 = vrot.slane %v2186_v9, 7  ;;  %v503_v22 = vrot.slane %v2193_v14, 7  ;;  %v2206_v24 = vld [vmem:[#allocation8 + $0x2] ss:$0 sm:$0xff]  ;;  %s1372_s16 = scalar_lea.sflag [#allocation4], %s2145_s27 }
  0x41   : > { %vm459_vm3 = vcmp.lt.s32.totalorder %v2172_v2, 15  ;;  %v475_v25 = vsel %vm473_vm1, %v472_v16, %v471_v15  ;;  %v495_v27 = vsel %vm480_vm2, %v493_v12, %v494_v13  ;;  %v508_v28 = vrot.slane %v2186_v9, 1  ;;  %v2215_v29 = vld [vmem:[#allocation8 + $0x3] ss:$0 sm:$0xff]  ;;  %v2217_v30 = vld [vmem:[#allocation8 + $0x4] ss:$0 sm:$0xff] }
  0x42   : > { %v481_v26 = vsel %vm480_vm2, %v478_v17, %v479_v18  ;;  %v476_v31 = vsel %vm456_vm0, %v475_v25, 0.0  ;;  %v505_v32 = vsel %vm473_vm1, %v503_v22, %v502_v21  ;;  %v509_v33 = vrot.slane %v2193_v14, 1  ;;  %v2225_v35 = vld [vmem:[#allocation8 + $0x5] ss:$0 sm:$0xff]  ;;  %v2227_v36 = vld [vmem:[#allocation8 + $0x6] ss:$0 sm:$0xff] }
  0x43   : > { %v518_v34 = vmul.f32 %v2204_v23, %v465_v5  ;;  %v491_v37 = vsel %vm456_vm0, %v490_v20, 0.0  ;;  %v506_v38 = vsel %vm456_vm0, %v505_v32, 0.0  ;;  %v515_v39 = vmul.f32 %v2198_v19, %v476_v31  ;;  %v2235_v41 = vld [vmem:[#allocation8 + $0x7] ss:$0 sm:$0xff]  ;;  %v2237_v42 = vld [vmem:[#allocation8 + $0x8] ss:$0 sm:$0xff] }
  0x44   : > { %v523_v40 = vmul.f32 %v2206_v24, %v481_v26  ;;  %v510_v43 = vsel %vm480_vm2, %v508_v28, %v509_v33  ;;  %v528_v44 = vmul.f32 %v2215_v29, %v491_v37  ;;  %v533_v45 = vmul.f32 %v2217_v30, %v2180_v7  ;;  %v2299_v31 = vld [vmem:[%s2151_s24 + $0x28] sm:$0xff]  ;;  %s1891_s15 = sshra.s32 %s1391_s1, 4  ;;  %s1892_s15 = int_to_ptr.hbm [resolvable:$true] %s1891_s15 }
  0x45   : > { %v538_v46 = vmul.f32 %v2225_v35, %v495_v27  ;;  %v520_v47 = vadd.f32 %v518_v34, %v515_v39  ;;  %v543_v48 = vmul.f32 %v2227_v36, %v506_v38  ;;  %v548_v49 = vmul.f32 %v2235_v41, %v2186_v9  ;;  %s1893_s3 = scalar_lea.hbm %s1892_s15, 256  ;;  %p1898_p10 = scmp.lt.s32.totalorder %s1892_s15, %s3177_s5 }
  0x46   : > { %v553_v50 = vmul.f32 %v2237_v42, %v510_v43  ;;  %v579_v51 = vmul.f32 %v2198_v19, %v491_v37  ;;  %v2251_v52 = vmul.f32 %v2206_v24, %v495_v27  ;;  %v2254_v53 = vmul.f32 %v2215_v29, %v506_v38  ;;  %p1894_p7 = scmp.ne.s32.totalorder %s1892_s15, %s1893_s3 }
  0x47   : > { %v633_v54 = vmul.f32 %v2198_v19, %v506_v38  ;;  %v525_v55 = vadd.f32 %v523_v40, %v520_v47  ;;  %v635_v56 = vmul.f32 %v2204_v23, %v2186_v9  ;;  %v639_v57 = vmul.f32 %v2206_v24, %v510_v43 }
  0x48   : > { %v474_v58 = vsel %vm473_vm1, %v471_v15, %v472_v16  ;;  %v2263_v59 = vmul.f32 %v2225_v35, %v510_v43  ;;  %v482_v60 = vsel %vm480_vm2, %v479_v18, %v478_v17  ;;  %v489_v61 = vsel %vm473_vm1, %v487_v10, %v488_v11  ;;  %p1895_p8 = pnand %p1894_p7, %p2096_p0 }
  0x49   : > { %v496_v62 = vsel %vm480_vm2, %v494_v13, %v493_v12  ;;  %v530_v63 = vadd.f32 %v528_v44, %v525_v55  ;;  %v637_v0 = vadd.f32 %v635_v56, %v633_v54  ;;  %v484_v3 = vsel %vm459_vm3, %v482_v60, 0.0  ;;  %v2314_v55 = vld [vmem:[%s3176_s4] ss:$0 sm:$0xff] }
  0x4a   : > { %v504_v4 = vsel %vm473_vm1, %v502_v21, %v503_v22  ;;  %v511_v5 = vsel %vm480_vm2, %v509_v33, %v508_v28  ;;  %v516_v15 = vmul.f32 %v2198_v19, %v474_v58  ;;  %v519_v10 = vmul.f32 %v2204_v23, %v2176_v6  ;;  %v2296_v28 = vld [vmem:[%s2151_s24 + $0x20] sm:$0xff]  ;;  %p1896_p9 = pneg %p1895_p8 }
  0x4b   : > { %v524_v11 = vmul.f32 %v2206_v24, %v484_v3  ;;  %v535_v12 = vadd.f32 %v533_v45, %v530_v63  ;;  %v2281_v13 = vadd.f32 %v639_v57, %v637_v0  ;;  %v498_v16 = vsel %vm459_vm3, %v496_v62, 0.0 }
  0x4c   : > { %v513_v17 = vsel %vm459_vm3, %v511_v5, 0.0  ;;  %v521_v18 = vadd.f32 %v519_v10, %v516_v15  ;;  %v529_v20 = vmul.f32 %v2215_v29, %v489_v61  ;;  %v534_v21 = vmul.f32 %v2217_v30, %v2183_v8 }
  0x4d   : > { %v539_v22 = vmul.f32 %v2225_v35, %v498_v16  ;;  %v540_v6 = vadd.f32 %v538_v46, %v535_v12  ;;  %v544_v25 = vmul.f32 %v2227_v36, %v504_v4  ;;  %v549_v26 = vmul.f32 %v2235_v41, %v2193_v14 }
  0x4e   : > { %v554_v27 = vmul.f32 %v2237_v42, %v513_v17  ;;  %v526_v32 = vadd.f32 %v524_v11, %v521_v18  ;;  %v580_v33 = vmul.f32 %v2198_v19, %v489_v61  ;;  %v586_v34 = vmul.f32 %v2206_v24, %v498_v16 }
  0x4f   : > { %v590_v37 = vmul.f32 %v2215_v29, %v504_v4  ;;  %v545_v38 = vadd.f32 %v543_v48, %v540_v6  ;;  %v634_v39 = vmul.f32 %v2198_v19, %v504_v4  ;;  %v636_v40 = vmul.f32 %v2204_v23, %v2193_v14 }
  0x50   : > { %v640_v43 = vmul.f32 %v2206_v24, %v513_v17  ;;  %v531_v44 = vadd.f32 %v529_v20, %v526_v32  ;;  %v567_v45 = vrot.slane %v2296_v28, 7  ;;  %v568_v46 = vrot.slane %v2299_v31, 7 }
  0x51   : > { %v573_v47 = vrot.slane %v2296_v28, 1  ;;  %v550_v54 = vadd.f32 %v548_v49, %v545_v38  ;;  %v638_v48 = vadd.f32 %v636_v40, %v634_v39  ;;  %v574_v56 = vrot.slane %v2299_v31, 1 }
  0x52   : > { %v581_v57 = vmul.f32 %v2204_v23, %v2180_v7  ;;  %v536_v58 = vadd.f32 %v534_v21, %v531_v44  ;;  %v2320_v60 = vmul.f32 %v2225_v35, %v513_v17  ;;  %v570_v61 = vsel %vm473_vm1, %v568_v46, %v567_v45  ;;  %v2364_v44 = vld [vmem:[%s2151_s24 + $0x30] sm:$0xff] }
  0x53   : > { %v593_v49 = vmul.f32 %v2217_v30, %v2186_v9  ;;  %v555_v62 = vadd.f32 %v553_v50, %v550_v54  ;;  %v571_v63 = vsel %vm456_vm0, %v570_v61, 0.0  ;;  %v575_v0 = vsel %vm480_vm2, %v573_v47, %v574_v56 }
  0x54   : > { %v605_v7 = vmul.f32 %v2235_v41, %v2296_v28  ;;  %v541_v3 = vadd.f32 %v539_v22, %v536_v58  ;;  %v2332_v4 = vadd.f32 %v640_v43, %v638_v48  ;;  %v583_v5 = vadd.f32 %v581_v57, %v579_v51 }
  0x55   : > { %v601_v15 = vmul.f32 %v2227_v36, %v571_v63  ;;  %v560_v10 = vadd.f32 %v2314_v55, %v555_v62  ;;  %v609_v9 = vmul.f32 %v2237_v42, %v575_v0  ;;  %v643_v50 = vmul.f32 %v2215_v29, %v571_v63 }
  0x56   : > { %v687_v11 = vmul.f32 %v2198_v19, %v571_v63  ;;  %v546_v12 = vadd.f32 %v544_v25, %v541_v3  ;;  %v587_v16 = vadd.f32 %v2251_v52, %v583_v5  ;;  %v689_v17 = vmul.f32 %v2204_v23, %v2296_v28 }
  0x57   : > { %v693_v18 = vmul.f32 %v2206_v24, %v575_v0  ;;  %562 = vst [vmem:[%s2345_s26] sm:$0xff] %v560_v10  ;;  %v651_v51 = vmul.f32 %v2225_v35, %v575_v0  ;;  %v569_v20 = vsel %vm473_vm1, %v567_v45, %v568_v46  ;;  %v576_v52 = vsel %vm480_vm2, %v574_v56, %v573_v47  ;;  %v2370_v46 = vld [vmem:[%s2151_s24 + $0x38] sm:$0xff] }
  0x58   : > { %v582_v21 = vmul.f32 %v2204_v23, %v2183_v8  ;;  %v551_v22 = vadd.f32 %v549_v26, %v546_v12  ;;  %v591_v6 = vadd.f32 %v2254_v53, %v587_v16  ;;  %v691_v25 = vadd.f32 %v689_v17, %v687_v11 }
  0x59   : > { %v594_v32 = vmul.f32 %v2217_v30, %v2193_v14  ;;  %v578_v38 = vsel %vm459_vm3, %v576_v52, 0.0  ;;  %v602_v40 = vmul.f32 %v2227_v36, %v569_v20  ;;  %v606_v43 = vmul.f32 %v2235_v41, %v2299_v31 }
  0x5a   : > { %v584_v39 = vadd.f32 %v582_v21, %v580_v33  ;;  %v556_v45 = vadd.f32 %v554_v27, %v551_v22  ;;  %v595_v8 = vadd.f32 %v593_v49, %v591_v6  ;;  %v2366_v26 = vadd.f32 %v693_v18, %v691_v25 }
  0x5b   : > { %v610_v53 = vmul.f32 %v2237_v42, %v578_v38  ;;  %v644_v47 = vmul.f32 %v2215_v29, %v569_v20  ;;  %v688_v33 = vmul.f32 %v2198_v19, %v569_v20  ;;  %v690_v54 = vmul.f32 %v2204_v23, %v2299_v31 }
  0x5c   : > { %v588_v14 = vadd.f32 %v586_v34, %v584_v39  ;;  %v561_v48 = vadd.f32 %v2314_v55, %v556_v45  ;;  %v599_v27 = vadd.f32 %v2263_v59, %v595_v8  ;;  %v694_v56 = vmul.f32 %v2206_v24, %v578_v38 }
  0x5d   : > { %v621_v57 = vrot.slane %v2364_v44, 7  ;;  %v692_v61 = vadd.f32 %v690_v54, %v688_v33  ;;  %v622_v49 = vrot.slane %v2370_v46, 7  ;;  %v627_v34 = vrot.slane %v2364_v44, 1 }
  0x5e   : > { %v592_v58 = vadd.f32 %v590_v37, %v588_v14  ;;  %563 = vst [vmem:[%s2345_s26 + $0x8] sm:$0xff] %v561_v48  ;;  %v603_v62 = vadd.f32 %v601_v15, %v599_v27  ;;  %v628_v63 = vrot.slane %v2370_v46, 1  ;;  %v645_v0 = vadd.f32 %v643_v50, %v2281_v13  ;;  %v2422_v48 = vld [vmem:[%s2151_s24 + $0x40] sm:$0xff] }
  0x5f   : > { %v647_v3 = vmul.f32 %v2217_v30, %v2296_v28  ;;  %v652_v5 = vmul.f32 %v2225_v35, %v578_v38  ;;  %v2388_v10 = vadd.f32 %v694_v56, %v692_v61  ;;  %v624_v37 = vsel %vm473_vm1, %v622_v49, %v621_v57 }
  0x60   : > { %v596_v59 = vadd.f32 %v594_v32, %v592_v58  ;;  %v607_v11 = vadd.f32 %v605_v7, %v603_v62  ;;  %v625_v12 = vsel %vm456_vm0, %v624_v37, 0.0  ;;  %v629_v15 = vsel %vm480_vm2, %v627_v34, %v628_v63 }
  0x61   : > { %v649_v16 = vadd.f32 %v647_v3, %v645_v0  ;;  %v655_v28 = vmul.f32 %v2227_v36, %v625_v12  ;;  %v659_v50 = vmul.f32 %v2235_v41, %v2364_v44  ;;  %v663_v17 = vmul.f32 %v2237_v42, %v629_v15 }
  0x62   : > { %v600_v13 = vadd.f32 %v2320_v60, %v596_v59  ;;  %v611_v18 = vadd.f32 %v609_v9, %v607_v11  ;;  %v697_v7 = vmul.f32 %v2215_v29, %v625_v12  ;;  %v741_v52 = vmul.f32 %v2198_v19, %v625_v12 }
  0x63   : > { %v653_v20 = vadd.f32 %v651_v51, %v649_v16  ;;  %v705_v22 = vmul.f32 %v2225_v35, %v629_v15  ;;  %v743_v60 = vmul.f32 %v2204_v23, %v2364_v44  ;;  %v747_v6 = vmul.f32 %v2206_v24, %v629_v15 }
  0x64   : > { %v604_v21 = vadd.f32 %v602_v40, %v600_v13  ;;  %v613_v25 = vadd.f32 %v2314_v55, %v611_v18  ;;  %v630_v9 = vsel %vm480_vm2, %v628_v63, %v627_v34  ;;  %v646_v51 = vadd.f32 %v644_v47, %v2332_v4 }
  0x65   : > { %v657_v32 = vadd.f32 %v655_v28, %v653_v20  ;;  %v745_v39 = vadd.f32 %v743_v60, %v741_v52  ;;  %v623_v40 = vsel %vm473_vm1, %v621_v57, %v622_v49  ;;  %v648_v45 = vmul.f32 %v2217_v30, %v2299_v31  ;;  %v2428_v31 = vld [vmem:[%s2151_s24 + $0x48] sm:$0xff] }
  0x66   : > { %v608_v38 = vadd.f32 %v606_v43, %v604_v21  ;;  %1583 = vst [vmem:[%s2345_s26 + $0x10] sm:$0xff] %v613_v25  ;;  %v632_v14 = vsel %vm459_vm3, %v630_v9, 0.0  ;;  %v656_v33 = vmul.f32 %v2227_v36, %v623_v40  ;;  %v660_v54 = vmul.f32 %v2235_v41, %v2370_v46 }
  0x67   : > { %v661_v8 = vadd.f32 %v659_v50, %v657_v32  ;;  %v2424_v43 = vadd.f32 %v747_v6, %v745_v39  ;;  %v650_v47 = vadd.f32 %v648_v45, %v646_v51  ;;  %v664_v27 = vmul.f32 %v2237_v42, %v632_v14 }
  0x68   : > { %v612_v4 = vadd.f32 %v610_v53, %v608_v38  ;;  %v698_v57 = vmul.f32 %v2215_v29, %v623_v40  ;;  %v742_v58 = vmul.f32 %v2198_v19, %v623_v40  ;;  %v744_v61 = vmul.f32 %v2204_v23, %v2370_v46 }
  0x69   : > { %v665_v56 = vadd.f32 %v663_v17, %v661_v8  ;;  %v654_v53 = vadd.f32 %v652_v5, %v650_v47  ;;  %v748_v34 = vmul.f32 %v2206_v24, %v632_v14  ;;  %v675_v62 = vrot.slane %v2422_v48, 7 }
  0x6a   : > { %v614_v49 = vadd.f32 %v2314_v55, %v612_v4  ;;  %v746_v0 = vadd.f32 %v744_v61, %v742_v58  ;;  %v676_v3 = vrot.slane %v2428_v31, 7  ;;  %v681_v59 = vrot.slane %v2422_v48, 1  ;;  %v2479_v4 = vld [vmem:[%s2151_s24 + $0x50] sm:$0xff] }
  0x6b   : > { %v667_v63 = vadd.f32 %v2314_v55, %v665_v56  ;;  %v658_v37 = vadd.f32 %v656_v33, %v654_v53  ;;  %v682_v11 = vrot.slane %v2428_v31, 1  ;;  %v699_v12 = vadd.f32 %v697_v7, %v2366_v26 }
  0x6c   : > { %1584 = vst [vmem:[%s2345_s26 + $0x18] sm:$0xff] %v614_v49  ;;  %v701_v5 = vmul.f32 %v2217_v30, %v2364_v44  ;;  %v706_v15 = vmul.f32 %v2225_v35, %v632_v14  ;;  %v2447_v16 = vadd.f32 %v748_v34, %v746_v0  ;;  %v678_v13 = vsel %vm473_vm1, %v676_v3, %v675_v62 }
  0x6d   : > { %1587 = vst [vmem:[%s2345_s26 + $0x20] sm:$0xff] %v667_v63  ;;  %v797_v28 = vmul.f32 %v2204_v23, %v2422_v48  ;;  %v662_v50 = vadd.f32 %v660_v54, %v658_v37  ;;  %v679_v17 = vsel %vm456_vm0, %v678_v13, 0.0  ;;  %v683_v26 = vsel %vm480_vm2, %v681_v59, %v682_v11 }
  0x6e   : > { %v703_v18 = vadd.f32 %v701_v5, %v699_v12  ;;  %v709_v44 = vmul.f32 %v2227_v36, %v679_v17  ;;  %v713_v20 = vmul.f32 %v2235_v41, %v2422_v48  ;;  %v717_v7 = vmul.f32 %v2237_v42, %v683_v26 }
  0x6f   : > { %v751_v52 = vmul.f32 %v2215_v29, %v679_v17  ;;  %v666_v21 = vadd.f32 %v664_v27, %v662_v50  ;;  %v795_v6 = vmul.f32 %v2198_v19, %v679_v17  ;;  %v801_v25 = vmul.f32 %v2206_v24, %v683_v26 }
  0x70   : > { %v707_v60 = vadd.f32 %v705_v22, %v703_v18  ;;  %v677_v32 = vsel %vm473_vm1, %v675_v62, %v676_v3  ;;  %v684_v9 = vsel %vm480_vm2, %v682_v11, %v681_v59  ;;  %v700_v51 = vadd.f32 %v698_v57, %v2388_v10  ;;  %v2482_v10 = vld [vmem:[%s2151_s24 + $0x58] sm:$0xff] }
  0x71   : > { %v702_v38 = vmul.f32 %v2217_v30, %v2370_v46  ;;  %v668_v39 = vadd.f32 %v2314_v55, %v666_v21  ;;  %v799_v40 = vadd.f32 %v797_v28, %v795_v6  ;;  %v686_v45 = vsel %vm459_vm3, %v684_v9, 0.0 }
  0x72   : > { %v711_v22 = vadd.f32 %v709_v44, %v707_v60  ;;  %v759_v8 = vmul.f32 %v2225_v35, %v683_v26  ;;  %v710_v33 = vmul.f32 %v2227_v36, %v677_v32  ;;  %v714_v54 = vmul.f32 %v2235_v41, %v2428_v31 }
  0x73   : > { %v704_v14 = vadd.f32 %v702_v38, %v700_v51  ;;  %1588 = vst [vmem:[%s2345_s26 + $0x28] sm:$0xff] %v668_v39  ;;  %v2485_v47 = vadd.f32 %v801_v25, %v799_v40  ;;  %v718_v27 = vmul.f32 %v2237_v42, %v686_v45  ;;  %v752_v56 = vmul.f32 %v2215_v29, %v677_v32 }
  0x74   : > { %v715_v46 = vadd.f32 %v713_v20, %v711_v22  ;;  %v796_v58 = vmul.f32 %v2198_v19, %v677_v32  ;;  %v798_v61 = vmul.f32 %v2204_v23, %v2428_v31  ;;  %v802_v49 = vmul.f32 %v2206_v24, %v686_v45 }
  0x75   : > { %v708_v57 = vadd.f32 %v706_v15, %v704_v14  ;;  %v729_v34 = vrot.slane %v2479_v4, 7  ;;  %v730_v62 = vrot.slane %v2482_v10, 7  ;;  %v735_v63 = vrot.slane %v2479_v4, 1  ;;  %v2536_v14 = vld [vmem:[%s2151_s24 + $0x68] sm:$0xff] }
  0x76   : > { %v719_v53 = vadd.f32 %v717_v7, %v715_v46  ;;  %v800_v3 = vadd.f32 %v798_v61, %v796_v58  ;;  %v736_v59 = vrot.slane %v2482_v10, 1  ;;  %v753_v37 = vadd.f32 %v751_v52, %v2424_v43 }
  0x77   : > { %v712_v0 = vadd.f32 %v710_v33, %v708_v57  ;;  %v760_v12 = vmul.f32 %v2225_v35, %v686_v45  ;;  %v732_v5 = vsel %vm473_vm1, %v730_v62, %v729_v34  ;;  %v755_v15 = vmul.f32 %v2217_v30, %v2422_v48 }
  0x78   : > { %v721_v11 = vadd.f32 %v2314_v55, %v719_v53  ;;  %v733_v28 = vsel %vm456_vm0, %v732_v5, 0.0  ;;  %v737_v50 = vsel %vm480_vm2, %v735_v63, %v736_v59  ;;  %v767_v43 = vmul.f32 %v2235_v41, %v2479_v4 }
  0x79   : > { %v716_v13 = vadd.f32 %v714_v54, %v712_v0  ;;  %v2511_v17 = vadd.f32 %v802_v49, %v800_v3  ;;  %v757_v26 = vadd.f32 %v755_v15, %v753_v37  ;;  %v763_v18 = vmul.f32 %v2227_v36, %v733_v28 }
  0x7a   : > { %1591 = vst [vmem:[%s2345_s26 + $0x30] sm:$0xff] %v721_v11  ;;  %v771_v44 = vmul.f32 %v2237_v42, %v737_v50  ;;  %v805_v48 = vmul.f32 %v2215_v29, %v733_v28  ;;  %v849_v7 = vmul.f32 %v2198_v19, %v733_v28  ;;  %v851_v52 = vmul.f32 %v2204_v23, %v2479_v4 }
  0x7b   : > { %v720_v20 = vadd.f32 %v718_v27, %v716_v13  ;;  %v761_v21 = vadd.f32 %v759_v8, %v757_v26  ;;  %v813_v60 = vmul.f32 %v2225_v35, %v737_v50  ;;  %v855_v6 = vmul.f32 %v2206_v24, %v737_v50  ;;  %v2533_v8 = vld [vmem:[%s2151_s24 + $0x60] sm:$0xff] }
  0x7c   : > { %v738_v25 = vsel %vm480_vm2, %v736_v59, %v735_v63  ;;  %v853_v9 = vadd.f32 %v851_v52, %v849_v7  ;;  %v731_v51 = vsel %vm473_vm1, %v729_v34, %v730_v62  ;;  %v754_v38 = vadd.f32 %v752_v56, %v2447_v16 }
  0x7d   : > { %v722_v32 = vadd.f32 %v2314_v55, %v720_v20  ;;  %v765_v39 = vadd.f32 %v763_v18, %v761_v21  ;;  %v740_v22 = vsel %vm459_vm3, %v738_v25, 0.0  ;;  %v756_v40 = vmul.f32 %v2217_v30, %v2428_v31 }
  0x7e   : > { %v764_v45 = vmul.f32 %v2227_v36, %v731_v51  ;;  %v2539_v33 = vadd.f32 %v855_v6, %v853_v9  ;;  %v768_v54 = vmul.f32 %v2235_v41, %v2482_v10  ;;  %v772_v16 = vmul.f32 %v2237_v42, %v740_v22 }
  0x7f   : > { %1592 = vst [vmem:[%s2345_s26 + $0x38] sm:$0xff] %v722_v32  ;;  %v806_v46 = vmul.f32 %v2215_v29, %v731_v51  ;;  %v769_v27 = vadd.f32 %v767_v43, %v765_v39  ;;  %v758_v56 = vadd.f32 %v756_v40, %v754_v38  ;;  %v850_v31 = vmul.f32 %v2198_v19, %v731_v51 }
  0x80   : > { %v852_v57 = vmul.f32 %v2204_v23, %v2482_v10  ;;  %v856_v58 = vmul.f32 %v2206_v24, %v740_v22  ;;  %v783_v61 = vrot.slane %v2533_v8, 7  ;;  %v784_v49 = vrot.slane %v2536_v14, 7 }
  0x81   : > { %v789_v53 = vrot.slane %v2533_v8, 1  ;;  %v773_v34 = vadd.f32 %v771_v44, %v769_v27  ;;  %v762_v62 = vadd.f32 %v760_v12, %v758_v56  ;;  %v790_v0 = vrot.slane %v2536_v14, 1 }
  0x82   : > { %v854_v63 = vadd.f32 %v852_v57, %v850_v31  ;;  %v814_v3 = vmul.f32 %v2225_v35, %v740_v22  ;;  %v786_v59 = vsel %vm473_vm1, %v784_v49, %v783_v61  ;;  %v807_v37 = vadd.f32 %v805_v48, %v2485_v47 }
  0x83   : > { %v809_v11 = vmul.f32 %v2217_v30, %v2479_v4  ;;  %v775_v5 = vadd.f32 %v2314_v55, %v773_v34  ;;  %v766_v15 = vadd.f32 %v764_v45, %v762_v62  ;;  %v787_v13 = vsel %vm456_vm0, %v786_v59, 0.0  ;;  %v2591_v45 = vld [vmem:[%s2151_s24 + $0x70] sm:$0xff] }
  0x84   : > { %v821_v12 = vmul.f32 %v2235_v41, %v2533_v8  ;;  %v2564_v28 = vadd.f32 %v856_v58, %v854_v63  ;;  %v791_v50 = vsel %vm480_vm2, %v789_v53, %v790_v0  ;;  %v817_v47 = vmul.f32 %v2227_v36, %v787_v13 }
  0x85   : > { %v811_v43 = vadd.f32 %v809_v11, %v807_v37  ;;  %1595 = vst [vmem:[%s2345_s26 + $0x40] sm:$0xff] %v775_v5  ;;  %v770_v26 = vadd.f32 %v768_v54, %v766_v15  ;;  %v825_v4 = vmul.f32 %v2237_v42, %v791_v50  ;;  %v859_v18 = vmul.f32 %v2215_v29, %v787_v13  ;;  %v2594_v54 = vld [vmem:[%s2151_s24 + $0x78] sm:$0xff] }
  0x86   : > { %v903_v44 = vmul.f32 %v2198_v19, %v787_v13  ;;  %v867_v48 = vmul.f32 %v2225_v35, %v791_v50  ;;  %v905_v7 = vmul.f32 %v2204_v23, %v2533_v8  ;;  %v909_v52 = vmul.f32 %v2206_v24, %v791_v50 }
  0x87   : > { %v815_v20 = vadd.f32 %v813_v60, %v811_v43  ;;  %v774_v21 = vadd.f32 %v772_v16, %v770_v26  ;;  %v792_v6 = vsel %vm480_vm2, %v790_v0, %v789_v53  ;;  %v808_v25 = vadd.f32 %v806_v46, %v2511_v17 }
  0x88   : > { %v810_v32 = vmul.f32 %v2217_v30, %v2482_v10  ;;  %v907_v9 = vadd.f32 %v905_v7, %v903_v44  ;;  %v785_v51 = vsel %vm473_vm1, %v783_v61, %v784_v49  ;;  %v794_v38 = vsel %vm459_vm3, %v792_v6, 0.0 }
  0x89   : > { %v819_v60 = vadd.f32 %v817_v47, %v815_v20  ;;  %v776_v39 = vadd.f32 %v2314_v55, %v774_v21  ;;  %v818_v40 = vmul.f32 %v2227_v36, %v785_v51  ;;  %v822_v17 = vmul.f32 %v2235_v41, %v2536_v14 }
  0x8a   : > { %v812_v22 = vadd.f32 %v810_v32, %v808_v25  ;;  %v2596_v16 = vadd.f32 %v909_v52, %v907_v9  ;;  %v826_v46 = vmul.f32 %v2237_v42, %v794_v38  ;;  %v860_v27 = vmul.f32 %v2215_v29, %v785_v51 }
  0x8b   : > { %v823_v10 = vadd.f32 %v821_v12, %v819_v60  ;;  %1596 = vst [vmem:[%s2345_s26 + $0x48] sm:$0xff] %v776_v39  ;;  %v904_v31 = vmul.f32 %v2198_v19, %v785_v51  ;;  %v906_v57 = vmul.f32 %v2204_v23, %v2536_v14  ;;  %v910_v58 = vmul.f32 %v2206_v24, %v794_v38  ;;  %v2645_v39 = vld [vmem:[%s2151_s24 + $0x80] sm:$0xff] }
  0x8c   : > { %v816_v56 = vadd.f32 %v814_v3, %v812_v22  ;;  %v837_v49 = vrot.slane %v2591_v45, 7  ;;  %v838_v53 = vrot.slane %v2594_v54, 7  ;;  %v843_v34 = vrot.slane %v2591_v45, 1  ;;  %v2648_v22 = vld [vmem:[%s2151_s24 + $0x88] sm:$0xff] }
  0x8d   : > { %v827_v61 = vadd.f32 %v825_v4, %v823_v10  ;;  %v908_v63 = vadd.f32 %v906_v57, %v904_v31  ;;  %v844_v0 = vrot.slane %v2594_v54, 1  ;;  %v861_v3 = vadd.f32 %v859_v18, %v2539_v33 }
  0x8e   : > { %v820_v62 = vadd.f32 %v818_v40, %v816_v56  ;;  %v868_v37 = vmul.f32 %v2225_v35, %v794_v38  ;;  %v840_v11 = vsel %vm473_vm1, %v838_v53, %v837_v49  ;;  %v863_v5 = vmul.f32 %v2217_v30, %v2533_v8 }
  0x8f   : > { %v829_v59 = vadd.f32 %v2314_v55, %v827_v61  ;;  %v841_v13 = vsel %vm456_vm0, %v840_v11, 0.0  ;;  %v845_v12 = vsel %vm480_vm2, %v843_v34, %v844_v0  ;;  %v875_v33 = vmul.f32 %v2235_v41, %v2591_v45 }
  0x90   : > { %v824_v15 = vadd.f32 %v822_v17, %v820_v62  ;;  %v2623_v50 = vadd.f32 %v910_v58, %v908_v63  ;;  %v865_v43 = vadd.f32 %v863_v5, %v861_v3  ;;  %v871_v47 = vmul.f32 %v2227_v36, %v841_v13 }
  0x91   : > { %1599 = vst [vmem:[%s2345_s26 + $0x50] sm:$0xff] %v829_v59  ;;  %v879_v26 = vmul.f32 %v2237_v42, %v845_v12  ;;  %v913_v8 = vmul.f32 %v2215_v29, %v841_v13  ;;  %v957_v18 = vmul.f32 %v2198_v19, %v841_v13  ;;  %v959_v44 = vmul.f32 %v2204_v23, %v2591_v45 }
  0x92   : > { %v828_v4 = vadd.f32 %v826_v46, %v824_v15  ;;  %v869_v20 = vadd.f32 %v867_v48, %v865_v43  ;;  %v921_v7 = vmul.f32 %v2225_v35, %v845_v12  ;;  %v963_v52 = vmul.f32 %v2206_v24, %v845_v12 }
  0x93   : > { %v846_v21 = vsel %vm480_vm2, %v844_v0, %v843_v34  ;;  %v961_v25 = vadd.f32 %v959_v44, %v957_v18  ;;  %v839_v32 = vsel %vm473_vm1, %v837_v49, %v838_v53  ;;  %v862_v60 = vadd.f32 %v860_v27, %v2564_v28 }
  0x94   : > { %v830_v6 = vadd.f32 %v2314_v55, %v828_v4  ;;  %v873_v9 = vadd.f32 %v871_v47, %v869_v20  ;;  %v848_v51 = vsel %vm459_vm3, %v846_v21, 0.0  ;;  %v864_v48 = vmul.f32 %v2217_v30, %v2536_v14 }
  0x95   : > { %v872_v38 = vmul.f32 %v2227_v36, %v839_v32  ;;  %v2651_v40 = vadd.f32 %v963_v52, %v961_v25  ;;  %v876_v17 = vmul.f32 %v2235_v41, %v2594_v54  ;;  %v880_v28 = vmul.f32 %v2237_v42, %v848_v51 }
  0x96   : > { %1600 = vst [vmem:[%s2345_s26 + $0x58] sm:$0xff] %v830_v6  ;;  %v914_v10 = vmul.f32 %v2215_v29, %v839_v32  ;;  %v877_v46 = vadd.f32 %v875_v33, %v873_v9  ;;  %v866_v27 = vadd.f32 %v864_v48, %v862_v60  ;;  %v958_v14 = vmul.f32 %v2198_v19, %v839_v32 }
  0x97   : > { %v960_v56 = vmul.f32 %v2204_v23, %v2594_v54  ;;  %v964_v31 = vmul.f32 %v2206_v24, %v848_v51  ;;  %v891_v57 = vrot.slane %v2645_v39, 7  ;;  %v892_v58 = vrot.slane %v2648_v22, 7 }
  0x98   : > { %v897_v61 = vrot.slane %v2645_v39, 1  ;;  %v881_v49 = vadd.f32 %v879_v26, %v877_v46  ;;  %v870_v53 = vadd.f32 %v868_v37, %v866_v27  ;;  %v898_v62 = vrot.slane %v2648_v22, 1 }
  0x99   : > { %v962_v34 = vadd.f32 %v960_v56, %v958_v14  ;;  %v922_v63 = vmul.f32 %v2225_v35, %v848_v51  ;;  %v894_v0 = vsel %vm473_vm1, %v892_v58, %v891_v57  ;;  %v915_v3 = vadd.f32 %v913_v8, %v2596_v16 }
  0x9a   : > { %v917_v59 = vmul.f32 %v2217_v30, %v2591_v45  ;;  %v883_v11 = vadd.f32 %v2314_v55, %v881_v49  ;;  %v874_v5 = vadd.f32 %v872_v38, %v870_v53  ;;  %v895_v15 = vsel %vm456_vm0, %v894_v0, 0.0  ;;  %v2703_v38 = vld [vmem:[%s2151_s24 + $0x90] sm:$0xff] }
  0x9b   : > { %v929_v37 = vmul.f32 %v2235_v41, %v2645_v39  ;;  %v2676_v13 = vadd.f32 %v964_v31, %v962_v34  ;;  %v899_v12 = vsel %vm480_vm2, %v897_v61, %v898_v62  ;;  %v925_v16 = vmul.f32 %v2227_v36, %v895_v15 }
  0x9c   : > { %v919_v33 = vadd.f32 %v917_v59, %v915_v3  ;;  %1603 = vst [vmem:[%s2345_s26 + $0x60] sm:$0xff] %v883_v11  ;;  %v878_v43 = vadd.f32 %v876_v17, %v874_v5  ;;  %v933_v45 = vmul.f32 %v2237_v42, %v899_v12  ;;  %v967_v47 = vmul.f32 %v2215_v29, %v895_v15  ;;  %v2706_v17 = vld [vmem:[%s2151_s24 + $0x98] sm:$0xff] }
  0x9d   : > { %v1011_v26 = vmul.f32 %v2198_v19, %v895_v15  ;;  %v975_v8 = vmul.f32 %v2225_v35, %v899_v12  ;;  %v1013_v18 = vmul.f32 %v2204_v23, %v2645_v39  ;;  %v1017_v44 = vmul.f32 %v2206_v24, %v899_v12 }
  0x9e   : > { %v923_v4 = vadd.f32 %v921_v7, %v919_v33  ;;  %v882_v20 = vadd.f32 %v880_v28, %v878_v43  ;;  %v900_v52 = vsel %vm480_vm2, %v898_v62, %v897_v61  ;;  %v916_v21 = vadd.f32 %v914_v10, %v2623_v50 }
  0x9f   : > { %v918_v6 = vmul.f32 %v2217_v30, %v2594_v54  ;;  %v1015_v25 = vadd.f32 %v1013_v18, %v1011_v26  ;;  %v893_v32 = vsel %vm473_vm1, %v891_v57, %v892_v58  ;;  %v902_v60 = vsel %vm459_vm3, %v900_v52, 0.0 }
  0xa0   : > { %v927_v7 = vadd.f32 %v925_v16, %v923_v4  ;;  %v884_v9 = vadd.f32 %v2314_v55, %v882_v20  ;;  %v926_v48 = vmul.f32 %v2227_v36, %v893_v32  ;;  %v930_v50 = vmul.f32 %v2235_v41, %v2648_v22 }
  0xa1   : > { %v920_v51 = vadd.f32 %v918_v6, %v916_v21  ;;  %v2708_v28 = vadd.f32 %v1017_v44, %v1015_v25  ;;  %v934_v10 = vmul.f32 %v2237_v42, %v902_v60  ;;  %v968_v46 = vmul.f32 %v2215_v29, %v893_v32 }
  0xa2   : > { %v931_v54 = vadd.f32 %v929_v37, %v927_v7  ;;  %1604 = vst [vmem:[%s2345_s26 + $0x68] sm:$0xff] %v884_v9  ;;  %v1012_v14 = vmul.f32 %v2198_v19, %v893_v32  ;;  %v1014_v56 = vmul.f32 %v2204_v23, %v2648_v22  ;;  %v1018_v31 = vmul.f32 %v2206_v24, %v902_v60  ;;  %v2757_v9 = vld [vmem:[%s2151_s24 + $0xa0] sm:$0xff] }
  0xa3   : > { %v924_v27 = vadd.f32 %v922_v63, %v920_v51  ;;  %v945_v58 = vrot.slane %v2703_v38, 7  ;;  %v946_v61 = vrot.slane %v2706_v17, 7  ;;  %v951_v49 = vrot.slane %v2703_v38, 1  ;;  %v2760_v51 = vld [vmem:[%s2151_s24 + $0xa8] sm:$0xff] }
  0xa4   : > { %v935_v57 = vadd.f32 %v933_v45, %v931_v54  ;;  %v1016_v34 = vadd.f32 %v1014_v56, %v1012_v14  ;;  %v952_v62 = vrot.slane %v2706_v17, 1  ;;  %v969_v63 = vadd.f32 %v967_v47, %v2651_v40 }
  0xa5   : > { %v928_v53 = vadd.f32 %v926_v48, %v924_v27  ;;  %v976_v3 = vmul.f32 %v2225_v35, %v902_v60  ;;  %v948_v59 = vsel %vm473_vm1, %v946_v61, %v945_v58  ;;  %v971_v11 = vmul.f32 %v2217_v30, %v2645_v39 }
  0xa6   : > { %v937_v0 = vadd.f32 %v2314_v55, %v935_v57  ;;  %v949_v15 = vsel %vm456_vm0, %v948_v59, 0.0  ;;  %v953_v37 = vsel %vm480_vm2, %v951_v49, %v952_v62  ;;  %v983_v40 = vmul.f32 %v2235_v41, %v2703_v38 }
  0xa7   : > { %v932_v5 = vadd.f32 %v930_v50, %v928_v53  ;;  %v2735_v12 = vadd.f32 %v1018_v31, %v1016_v34  ;;  %v973_v33 = vadd.f32 %v971_v11, %v969_v63  ;;  %v979_v16 = vmul.f32 %v2227_v36, %v949_v15 }
  0xa8   : > { %1607 = vst [vmem:[%s2345_s26 + $0x70] sm:$0xff] %v937_v0  ;;  %v987_v43 = vmul.f32 %v2237_v42, %v953_v37  ;;  %v1021_v39 = vmul.f32 %v2215_v29, %v949_v15  ;;  %v1065_v47 = vmul.f32 %v2198_v19, %v949_v15  ;;  %v1067_v26 = vmul.f32 %v2204_v23, %v2703_v38 }
  0xa9   : > { %v936_v45 = vadd.f32 %v934_v10, %v932_v5  ;;  %v977_v4 = vadd.f32 %v975_v8, %v973_v33  ;;  %v1029_v18 = vmul.f32 %v2225_v35, %v953_v37  ;;  %v1071_v44 = vmul.f32 %v2206_v24, %v953_v37 }
  0xaa   : > { %v954_v20 = vsel %vm480_vm2, %v952_v62, %v951_v49  ;;  %v1069_v21 = vadd.f32 %v1067_v26, %v1065_v47  ;;  %v947_v6 = vsel %vm473_vm1, %v945_v58, %v946_v61  ;;  %v970_v7 = vadd.f32 %v968_v46, %v2676_v13 }
  0xab   : > { %v938_v52 = vadd.f32 %v2314_v55, %v936_v45  ;;  %v981_v25 = vadd.f32 %v979_v16, %v977_v4  ;;  %v956_v32 = vsel %vm459_vm3, %v954_v20, 0.0  ;;  %v972_v8 = vmul.f32 %v2217_v30, %v2648_v22 }
  0xac   : > { %v980_v60 = vmul.f32 %v2227_v36, %v947_v6  ;;  %v2763_v48 = vadd.f32 %v1071_v44, %v1069_v21  ;;  %v984_v50 = vmul.f32 %v2235_v41, %v2706_v17  ;;  %v988_v13 = vmul.f32 %v2237_v42, %v956_v32 }
  0xad   : > { %1608 = vst [vmem:[%s2345_s26 + $0x78] sm:$0xff] %v938_v52  ;;  %v1022_v54 = vmul.f32 %v2215_v29, %v947_v6  ;;  %v985_v10 = vadd.f32 %v983_v40, %v981_v25  ;;  %v974_v46 = vadd.f32 %v972_v8, %v970_v7  ;;  %v1066_v22 = vmul.f32 %v2198_v19, %v947_v6  ;;  %v2815_v6 = vld [vmem:[%s2151_s24 + $0xb0] sm:$0xff] }
  0xae   : > { %v1068_v27 = vmul.f32 %v2204_v23, %v2706_v17  ;;  %v1072_v14 = vmul.f32 %v2206_v24, %v956_v32  ;;  %v999_v56 = vrot.slane %v2757_v9, 7  ;;  %v1000_v31 = vrot.slane %v2760_v51, 7 }
  0xaf   : > { %v1005_v57 = vrot.slane %v2757_v9, 1  ;;  %v989_v58 = vadd.f32 %v987_v43, %v985_v10  ;;  %v978_v61 = vadd.f32 %v976_v3, %v974_v46  ;;  %v1006_v53 = vrot.slane %v2760_v51, 1 }
  0xb0   : > { %v1070_v49 = vadd.f32 %v1068_v27, %v1066_v22  ;;  %v1030_v34 = vmul.f32 %v2225_v35, %v956_v32  ;;  %v1002_v62 = vsel %vm473_vm1, %v1000_v31, %v999_v56  ;;  %v1023_v63 = vadd.f32 %v1021_v39, %v2708_v28  ;;  %v2823_v32 = vld [vmem:[#allocation8 + $0x3] ss:$0 sm:$0xff] }
  0xb1   : > { %v1025_v0 = vmul.f32 %v2217_v30, %v2703_v38  ;;  %v991_v59 = vadd.f32 %v2314_v55, %v989_v58  ;;  %v982_v11 = vadd.f32 %v980_v60, %v978_v61  ;;  %v1003_v5 = vsel %vm456_vm0, %v1002_v62, 0.0  ;;  %v2843_v61 = vld [vmem:[#allocation8 + $0x5] ss:$0 sm:$0xff] }
  0xb2   : > { %v1037_v3 = vmul.f32 %v2235_v41, %v2757_v9  ;;  %v2788_v15 = vadd.f32 %v1072_v14, %v1070_v49  ;;  %v1007_v37 = vsel %vm480_vm2, %v1005_v57, %v1006_v53  ;;  %v1033_v28 = vmul.f32 %v2227_v36, %v1003_v5 }
  0xb3   : > { %v1027_v40 = vadd.f32 %v1025_v0, %v1023_v63  ;;  %1611 = vst [vmem:[%s2345_s26 + $0x80] sm:$0xff] %v991_v59  ;;  %v986_v33 = vadd.f32 %v984_v50, %v982_v11  ;;  %v1041_v38 = vmul.f32 %v2237_v42, %v1007_v37  ;;  %v1075_v16 = vmul.f32 %v2215_v29, %v1003_v5  ;;  %v2827_v50 = vld [vmem:[#allocation8] ss:$0 sm:$0xff]  ;;  %v2856_v59 = vld [vmem:[#allocation8 + $0x7] ss:$0 sm:$0xff] }
  0xb4   : > { %v1119_v43 = vmul.f32 %v2198_v19, %v1003_v5  ;;  %v1083_v39 = vmul.f32 %v2225_v35, %v1007_v37  ;;  %v1121_v47 = vmul.f32 %v2204_v23, %v2757_v9  ;;  %v1125_v26 = vmul.f32 %v2206_v24, %v1007_v37  ;;  %v2863_v37 = vld [vmem:[#allocation8 + $0x6] ss:$0 sm:$0xff] }
  0xb5   : > { %v1031_v45 = vadd.f32 %v1029_v18, %v1027_v40  ;;  %v990_v4 = vadd.f32 %v988_v13, %v986_v33  ;;  %v1008_v44 = vsel %vm480_vm2, %v1006_v53, %v1005_v57  ;;  %v1024_v20 = vadd.f32 %v1022_v54, %v2735_v12  ;;  %v2834_v54 = vld [vmem:[#allocation8 + $0x2] ss:$0 sm:$0xff]  ;;  %v2866_v40 = vld [vmem:[#allocation8 + $0x8] ss:$0 sm:$0xff] }
  0xb6   : > { %v1026_v29 = vmul.f32 %v2217_v30, %v2706_v17  ;;  %v1123_v18 = vadd.f32 %v1121_v47, %v1119_v43  ;;  %v1001_v35 = vsel %vm473_vm1, %v999_v56, %v1000_v31  ;;  %v1010_v23 = vsel %vm459_vm3, %v1008_v44, 0.0  ;;  %v2818_v30 = vld [vmem:[%s2151_s24 + $0xb8] sm:$0xff] }
  0xb7   : > { %v1035_v19 = vadd.f32 %v1033_v28, %v1031_v45  ;;  %v992_v24 = vadd.f32 %v2314_v55, %v990_v4  ;;  %v1034_v21 = vmul.f32 %v2227_v36, %v1001_v35  ;;  %v1038_v12 = vmul.f32 %v2235_v41, %v2760_v51  ;;  %v2830_v41 = vld [vmem:[#allocation8 + $0x1] ss:$0 sm:$0xff] }
  0xb8   : > { %v1028_v52 = vadd.f32 %v1026_v29, %v1024_v20  ;;  %v2820_v7 = vadd.f32 %v1125_v26, %v1123_v18  ;;  %v1042_v25 = vmul.f32 %v2237_v42, %v1010_v23  ;;  %v1076_v8 = vmul.f32 %v2823_v32, %v1001_v35 }
  0xb9   : > { %v1039_v17 = vadd.f32 %v1037_v3, %v1035_v19  ;;  %1612 = vst [vmem:[%s2345_s26 + $0x88] sm:$0xff] %v992_v24  ;;  %v1120_v36 = vmul.f32 %v2827_v50, %v1001_v35  ;;  %v1122_v13 = vmul.f32 %v2830_v41, %v2760_v51  ;;  %v1126_v10 = vmul.f32 %v2834_v54, %v1010_v23  ;;  %v2887_v24 = vld [vmem:[%s2151_s24 + $0xc0] sm:$0xff] }
  0xba   : > { %v1032_v60 = vadd.f32 %v1030_v34, %v1028_v52  ;;  %v1053_v46 = vrot.slane %v2815_v6, 7  ;;  %v1054_v22 = vrot.slane %v2818_v30, 7  ;;  %v1059_v27 = vrot.slane %v2815_v6, 1  ;;  %v2848_v34 = vld [vmem:[#allocation8 + $0x4] ss:$0 sm:$0xff]  ;;  %v2890_v52 = vld [vmem:[%s2151_s24 + $0xc8] sm:$0xff] }
  0xbb   : > { %v1043_v42 = vadd.f32 %v1041_v38, %v1039_v17  ;;  %v1124_v56 = vadd.f32 %v1122_v13, %v1120_v36  ;;  %v1060_v31 = vrot.slane %v2818_v30, 1  ;;  %v1077_v57 = vadd.f32 %v1075_v16, %v2763_v48 }
  0xbc   : > { %v1036_v14 = vadd.f32 %v1034_v21, %v1032_v60  ;;  %v1084_v49 = vmul.f32 %v2843_v61, %v1010_v23  ;;  %v1056_v53 = vsel %vm473_vm1, %v1054_v22, %v1053_v46  ;;  %v1079_v62 = vmul.f32 %v2848_v34, %v2757_v9 }
  0xbd   : > { %v1045_v58 = vadd.f32 %v2314_v55, %v1043_v42  ;;  %v1057_v0 = vsel %vm456_vm0, %v1056_v53, 0.0  ;;  %v1061_v48 = vsel %vm480_vm2, %v1059_v27, %v1060_v31  ;;  %v1091_v11 = vmul.f32 %v2856_v59, %v2815_v6 }
  0xbe   : > { %v1040_v63 = vadd.f32 %v1038_v12, %v1036_v14  ;;  %v2861_v5 = vadd.f32 %v1126_v10, %v1124_v56  ;;  %v1081_v3 = vadd.f32 %v1079_v62, %v1077_v57  ;;  %v1087_v9 = vmul.f32 %v2863_v37, %v1057_v0 }
  0xbf   : > { %1615 = vst [vmem:[%s2345_s26 + $0x90] sm:$0xff] %v1045_v58  ;;  %v1095_v28 = vmul.f32 %v2866_v40, %v1061_v48  ;;  %v1129_v38 = vmul.f32 %v2823_v32, %v1057_v0  ;;  %v1173_v16 = vmul.f32 %v2827_v50, %v1057_v0  ;;  %v1175_v43 = vmul.f32 %v2830_v41, %v2815_v6  ;;  %v2916_v58 = vld [vmem:[%s3176_s4] ss:$0 sm:$0xff] }
  0xc0   : > { %v1044_v33 = vadd.f32 %v1042_v25, %v1040_v63  ;;  %v1085_v45 = vadd.f32 %v1083_v39, %v1081_v3  ;;  %v1137_v47 = vmul.f32 %v2843_v61, %v1061_v48  ;;  %v1179_v26 = vmul.f32 %v2834_v54, %v1061_v48 }
  0xc1   : > { %v1062_v4 = vsel %vm480_vm2, %v1060_v31, %v1059_v27  ;;  %v1177_v20 = vadd.f32 %v1175_v43, %v1173_v16  ;;  %v1055_v29 = vsel %vm473_vm1, %v1053_v46, %v1054_v22  ;;  %v1078_v19 = vadd.f32 %v1076_v8, %v2788_v15 }
  0xc2   : > { %v1046_v44 = vadd.f32 %v2314_v55, %v1044_v33  ;;  %v1089_v18 = vadd.f32 %v1087_v9, %v1085_v45  ;;  %v1064_v35 = vsel %vm459_vm3, %v1062_v4, 0.0  ;;  %v1080_v39 = vmul.f32 %v2848_v34, %v2760_v51 }
  0xc3   : > { %v1088_v23 = vmul.f32 %v2863_v37, %v1055_v29  ;;  %v2893_v55 = vadd.f32 %v1179_v26, %v1177_v20  ;;  %v1092_v21 = vmul.f32 %v2856_v59, %v2818_v30  ;;  %v1096_v15 = vmul.f32 %v2866_v40, %v1064_v35 }
  0xc4   : > { %1616 = vst [vmem:[%s2345_s26 + $0x98] sm:$0xff] %v1046_v44  ;;  %v1130_v12 = vmul.f32 %v2823_v32, %v1055_v29  ;;  %v1093_v17 = vadd.f32 %v1091_v11, %v1089_v18  ;;  %v1082_v25 = vadd.f32 %v1080_v39, %v1078_v19  ;;  %v1174_v51 = vmul.f32 %v2827_v50, %v1055_v29 }
  0xc5   : > { %v1176_v8 = vmul.f32 %v2830_v41, %v2818_v30  ;;  %v1180_v60 = vmul.f32 %v2834_v54, %v1064_v35  ;;  %v1107_v36 = vrot.slane %v2887_v24, 7  ;;  %v1108_v13 = vrot.slane %v2890_v52, 7 }
  0xc6   : > { %v1113_v10 = vrot.slane %v2887_v24, 1  ;;  %v1097_v42 = vadd.f32 %v1095_v28, %v1093_v17  ;;  %v1086_v46 = vadd.f32 %v1084_v49, %v1082_v25  ;;  %v1114_v27 = vrot.slane %v2890_v52, 1 }
  0xc7   : > { %v1178_v22 = vadd.f32 %v1176_v8, %v1174_v51  ;;  %v1138_v14 = vmul.f32 %v2843_v61, %v1064_v35  ;;  %v1110_v56 = vsel %vm473_vm1, %v1108_v13, %v1107_v36  ;;  %v1131_v31 = vadd.f32 %v1129_v38, %v2820_v7 }
  0xc8   : > { %v1133_v57 = vmul.f32 %v2848_v34, %v2815_v6  ;;  %v1099_v49 = vadd.f32 %v2916_v58, %v1097_v42  ;;  %v1090_v53 = vadd.f32 %v1088_v23, %v1086_v46  ;;  %v1111_v62 = vsel %vm456_vm0, %v1110_v56, 0.0  ;;  %v2950_v23 = vld [vmem:[%s2151_s24 + $0xd0] sm:$0xff] }
  0xc9   : > { %v1145_v63 = vmul.f32 %v2856_v59, %v2887_v24  ;;  %v2923_v0 = vadd.f32 %v1180_v60, %v1178_v22  ;;  %v1115_v7 = vsel %vm480_vm2, %v1113_v10, %v1114_v27  ;;  %v1141_v48 = vmul.f32 %v2863_v37, %v1111_v62 }
  0xca   : > { %v1135_v6 = vadd.f32 %v1133_v57, %v1131_v31  ;;  %1619 = vst [vmem:[%s2345_s26 + $0xa0] sm:$0xff] %v1099_v49  ;;  %v1094_v11 = vadd.f32 %v1092_v21, %v1090_v53  ;;  %v1149_v3 = vmul.f32 %v2866_v40, %v1115_v7  ;;  %v1183_v9 = vmul.f32 %v2823_v32, %v1111_v62  ;;  %v2953_v21 = vld [vmem:[%s2151_s24 + $0xd8] sm:$0xff] }
  0xcb   : > { %v1227_v28 = vmul.f32 %v2827_v50, %v1111_v62  ;;  %v1191_v38 = vmul.f32 %v2843_v61, %v1115_v7  ;;  %v1229_v16 = vmul.f32 %v2830_v41, %v2887_v24  ;;  %v1233_v43 = vmul.f32 %v2834_v54, %v1115_v7 }
  0xcc   : > { %v1139_v33 = vadd.f32 %v1137_v47, %v1135_v6  ;;  %v1098_v45 = vadd.f32 %v1096_v15, %v1094_v11  ;;  %v1116_v26 = vsel %vm480_vm2, %v1114_v27, %v1113_v10  ;;  %v1132_v4 = vadd.f32 %v1130_v12, %v2861_v5 }
  0xcd   : > { %v1134_v44 = vmul.f32 %v2848_v34, %v2818_v30  ;;  %v1231_v20 = vadd.f32 %v1229_v16, %v1227_v28  ;;  %v1109_v29 = vsel %vm473_vm1, %v1107_v36, %v1108_v13  ;;  %v1118_v19 = vsel %vm459_vm3, %v1116_v26, 0.0 }
  0xce   : > { %v1143_v47 = vadd.f32 %v1141_v48, %v1139_v33  ;;  %v1100_v18 = vadd.f32 %v2916_v58, %v1098_v45  ;;  %v1142_v39 = vmul.f32 %v2863_v37, %v1109_v29  ;;  %v1146_v5 = vmul.f32 %v2856_v59, %v2890_v52 }
  0xcf   : > { %v1136_v35 = vadd.f32 %v1134_v44, %v1132_v4  ;;  %v2955_v15 = vadd.f32 %v1233_v43, %v1231_v20  ;;  %v1150_v12 = vmul.f32 %v2866_v40, %v1118_v19  ;;  %v1184_v17 = vmul.f32 %v2823_v32, %v1109_v29 }
  0xd0   : > { %v1147_v30 = vadd.f32 %v1145_v63, %v1143_v47  ;;  %1620 = vst [vmem:[%s2345_s26 + $0xa8] sm:$0xff] %v1100_v18  ;;  %v1228_v51 = vmul.f32 %v2827_v50, %v1109_v29  ;;  %v1230_v8 = vmul.f32 %v2830_v41, %v2890_v52  ;;  %v1234_v60 = vmul.f32 %v2834_v54, %v1118_v19  ;;  %v3004_v18 = vld [vmem:[%s2151_s24 + $0xe0] sm:$0xff] }
  0xd1   : > { %v1140_v25 = vadd.f32 %v1138_v14, %v1136_v35  ;;  %v1161_v13 = vrot.slane %v2950_v23, 7  ;;  %v1162_v10 = vrot.slane %v2953_v21, 7  ;;  %v1167_v42 = vrot.slane %v2950_v23, 1  ;;  %v3007_v35 = vld [vmem:[%s2151_s24 + $0xe8] sm:$0xff] }
  0xd2   : > { %v1151_v36 = vadd.f32 %v1149_v3, %v1147_v30  ;;  %v1232_v22 = vadd.f32 %v1230_v8, %v1228_v51  ;;  %v1168_v27 = vrot.slane %v2953_v21, 1  ;;  %v1185_v14 = vadd.f32 %v1183_v9, %v2893_v55 }
  0xd3   : > { %v1144_v46 = vadd.f32 %v1142_v39, %v1140_v25  ;;  %v1192_v31 = vmul.f32 %v2843_v61, %v1118_v19  ;;  %v1164_v57 = vsel %vm473_vm1, %v1162_v10, %v1161_v13  ;;  %v1187_v49 = vmul.f32 %v2848_v34, %v2887_v24 }
  0xd4   : > { %v1153_v56 = vadd.f32 %v2916_v58, %v1151_v36  ;;  %v1165_v62 = vsel %vm456_vm0, %v1164_v57, 0.0  ;;  %v1169_v63 = vsel %vm480_vm2, %v1167_v42, %v1168_v27  ;;  %v1199_v55 = vmul.f32 %v2856_v59, %v2950_v23 }
  0xd5   : > { %v1148_v53 = vadd.f32 %v1146_v5, %v1144_v46  ;;  %v2982_v7 = vadd.f32 %v1234_v60, %v1232_v22  ;;  %v1189_v6 = vadd.f32 %v1187_v49, %v1185_v14  ;;  %v1195_v48 = vmul.f32 %v2863_v37, %v1165_v62 }
  0xd6   : > { %1623 = vst [vmem:[%s2345_s26 + $0xb0] sm:$0xff] %v1153_v56  ;;  %v1203_v11 = vmul.f32 %v2866_v40, %v1169_v63  ;;  %v1237_v24 = vmul.f32 %v2823_v32, %v1165_v62  ;;  %v1281_v9 = vmul.f32 %v2827_v50, %v1165_v62  ;;  %v1283_v28 = vmul.f32 %v2830_v41, %v2950_v23 }
  0xd7   : > { %v1152_v3 = vadd.f32 %v1150_v12, %v1148_v53  ;;  %v1193_v33 = vadd.f32 %v1191_v38, %v1189_v6  ;;  %v1245_v16 = vmul.f32 %v2843_v61, %v1169_v63  ;;  %v1287_v43 = vmul.f32 %v2834_v54, %v1169_v63 }
  0xd8   : > { %v1170_v45 = vsel %vm480_vm2, %v1168_v27, %v1167_v42  ;;  %v1285_v4 = vadd.f32 %v1283_v28, %v1281_v9  ;;  %v1163_v44 = vsel %vm473_vm1, %v1161_v13, %v1162_v10  ;;  %v1186_v47 = vadd.f32 %v1184_v17, %v2923_v0 }
  0xd9   : > { %v1154_v26 = vadd.f32 %v2916_v58, %v1152_v3  ;;  %v1197_v20 = vadd.f32 %v1195_v48, %v1193_v33  ;;  %v1172_v29 = vsel %vm459_vm3, %v1170_v45, 0.0  ;;  %v1188_v38 = vmul.f32 %v2848_v34, %v2890_v52 }
  0xda   : > { %v1196_v19 = vmul.f32 %v2863_v37, %v1163_v44  ;;  %v3010_v39 = vadd.f32 %v1287_v43, %v1285_v4  ;;  %v1200_v5 = vmul.f32 %v2856_v59, %v2953_v21  ;;  %v1204_v0 = vmul.f32 %v2866_v40, %v1172_v29 }
  0xdb   : > { %1624 = vst [vmem:[%s2345_s26 + $0xb8] sm:$0xff] %v1154_v26  ;;  %v1238_v30 = vmul.f32 %v2823_v32, %v1163_v44  ;;  %v1201_v12 = vadd.f32 %v1199_v55, %v1197_v20  ;;  %v1190_v17 = vadd.f32 %v1188_v38, %v1186_v47  ;;  %v1282_v52 = vmul.f32 %v2827_v50, %v1163_v44 }
  0xdc   : > { %v1284_v25 = vmul.f32 %v2830_v41, %v2953_v21  ;;  %v1288_v51 = vmul.f32 %v2834_v54, %v1172_v29  ;;  %v1215_v8 = vrot.slane %v3004_v18, 7  ;;  %v1216_v60 = vrot.slane %v3007_v35, 7 }
  0xdd   : > { %v1221_v36 = vrot.slane %v3004_v18, 1  ;;  %v1205_v13 = vadd.f32 %v1203_v11, %v1201_v12  ;;  %v1194_v10 = vadd.f32 %v1192_v31, %v1190_v17  ;;  %v1222_v46 = vrot.slane %v3007_v35, 1 }
  0xde   : > { %v1286_v42 = vadd.f32 %v1284_v25, %v1282_v52  ;;  %v1246_v22 = vmul.f32 %v2843_v61, %v1172_v29  ;;  %v1218_v27 = vsel %vm473_vm1, %v1216_v60, %v1215_v8  ;;  %v1239_v14 = vadd.f32 %v1237_v24, %v2955_v15 }
  0xdf   : > { %v1241_v56 = vmul.f32 %v2848_v34, %v2950_v23  ;;  %v1207_v57 = vadd.f32 %v2916_v58, %v1205_v13  ;;  %v1198_v49 = vadd.f32 %v1196_v19, %v1194_v10  ;;  %v1219_v53 = vsel %vm456_vm0, %v1218_v27, 0.0  ;;  %v1633_v19 = vld [vmem:[%s2151_s24 + $0xf0] sm:$0xff] }
  0xe0   : > { %v1253_v31 = vmul.f32 %v2856_v59, %v3004_v18  ;;  %v3035_v62 = vadd.f32 %v1288_v51, %v1286_v42  ;;  %v1223_v63 = vsel %vm480_vm2, %v1221_v36, %v1222_v46  ;;  %v1249_v15 = vmul.f32 %v2863_v37, %v1219_v53 }
  0xe1   : > { %v1243_v55 = vadd.f32 %v1241_v56, %v1239_v14  ;;  %1627 = vst [vmem:[%s2345_s26 + $0xc0] sm:$0xff] %v1207_v57  ;;  %v1202_v6 = vadd.f32 %v1200_v5, %v1198_v49  ;;  %v1257_v23 = vmul.f32 %v2866_v40, %v1223_v63  ;;  %v1291_v48 = vmul.f32 %v2823_v32, %v1219_v53  ;;  %v1634_v5 = vld [vmem:[%s2151_s24 + $0xf8] sm:$0xff]  ;;  %s1897_s24 = scalar_lea.hbm %s3177_s5, 512 }
  0xe2   : > { %v1332_v11 = vmul.f32 %v2827_v50, %v1219_v53  ;;  %v1299_v24 = vmul.f32 %v2843_v61, %v1223_v63  ;;  %v1334_v9 = vmul.f32 %v2830_v41, %v3004_v18  ;;  %v1338_v28 = vmul.f32 %v2834_v54, %v1223_v63  ;;  %p1899_p11 = scmp.lt.s32.totalorder %s1897_s24, %s1893_s3 }
  0xe3   : > { %v1247_v3 = vadd.f32 %v1245_v16, %v1243_v55  ;;  %v1206_v33 = vadd.f32 %v1204_v0, %v1202_v6  ;;  %v1224_v43 = vsel %vm480_vm2, %v1222_v46, %v1221_v36  ;;  %v1240_v45 = vadd.f32 %v1238_v30, %v2982_v7 }
  0xe4   : > { %v1242_v26 = vmul.f32 %v2848_v34, %v2953_v21  ;;  %v1336_v4 = vadd.f32 %v1334_v9, %v1332_v11  ;;  %v1217_v44 = vsel %vm473_vm1, %v1215_v8, %v1216_v60  ;;  %v1226_v47 = vsel %vm459_vm3, %v1224_v43, 0.0  ;;  %v467_v9 = vld [vmem:[%s2163_s14] sm:$0xff]  ;;  %p1900_p12 = por %p1899_p11, %p1898_p10 }
  0xe5   : > { %v1251_v16 = vadd.f32 %v1249_v15, %v1247_v3  ;;  %v1208_v20 = vadd.f32 %v2916_v58, %v1206_v33  ;;  %v1250_v38 = vmul.f32 %v2863_v37, %v1217_v44  ;;  %v1254_v7 = vmul.f32 %v2856_v59, %v3007_v35 }
  0xe6   : > { %v1244_v29 = vadd.f32 %v1242_v26, %v1240_v45  ;;  %v1340_v21 = vadd.f32 %v1338_v28, %v1336_v4  ;;  %v1258_v30 = vmul.f32 %v2866_v40, %v1226_v47  ;;  %v1292_v12 = vmul.f32 %v2823_v32, %v1217_v44  ;;  %v468_v28 = vld [vmem:[%s2163_s14 + $0x8] sm:$0xff]  ;;  %p1901_p13 = pnand %p1900_p12, %p1896_p9 }
  0xe7   : > { %v1255_v0 = vadd.f32 %v1253_v31, %v1251_v16  ;;  %1628 = vst [vmem:[%s2345_s26 + $0xc8] sm:$0xff] %v1208_v20  ;;  %v1333_v52 = vmul.f32 %v2827_v50, %v1217_v44  ;;  %v1335_v25 = vmul.f32 %v2830_v41, %v3007_v35  ;;  %v1339_v51 = vmul.f32 %v2834_v54, %v1226_v47 }
  0xe8   : > { %v1248_v17 = vadd.f32 %v1246_v22, %v1244_v29  ;;  %v1269_v60 = vrot.slane %v1633_v19, 7  ;;  %v1270_v36 = vrot.slane %v1634_v5, 7  ;;  %v1275_v13 = vrot.slane %v1633_v19, 1 }
  0xe9   : > { %v1259_v8 = vadd.f32 %v1257_v23, %v1255_v0  ;;  %v1337_v42 = vadd.f32 %v1335_v25, %v1333_v52  ;;  %v1276_v46 = vrot.slane %v1634_v5, 1  ;;  %v1293_v27 = vadd.f32 %v1291_v48, %v3010_v39 }
  0xea   : > { %v1252_v10 = vadd.f32 %v1250_v38, %v1248_v17  ;;  %v1300_v22 = vmul.f32 %v2843_v61, %v1226_v47  ;;  %v1272_v50 = vsel %vm473_vm1, %v1270_v36, %v1269_v60  ;;  %v1295_v41 = vmul.f32 %v2848_v34, %v3004_v18 }
  0xeb   : > { %v1261_v14 = vadd.f32 %v2916_v58, %v1259_v8  ;;  %v1273_v56 = vsel %vm456_vm0, %v1272_v50, 0.0  ;;  %v1277_v57 = vsel %vm480_vm2, %v1275_v13, %v1276_v46  ;;  %v1307_v39 = vmul.f32 %v2856_v59, %v1633_v19 }
  0xec   : > { %v1256_v54 = vadd.f32 %v1254_v7, %v1252_v10  ;;  %v1341_v49 = vadd.f32 %v1339_v51, %v1337_v42  ;;  %v1297_v53 = vadd.f32 %v1295_v41, %v1293_v27  ;;  %v1303_v31 = vmul.f32 %v2863_v37, %v1273_v56 }
  0xed   : > { %1631 = vst [vmem:[%s2345_s26 + $0xd0] sm:$0xff] %v1261_v14  ;;  %v1311_v63 = vmul.f32 %v2866_v40, %v1277_v57  ;;  %v1342_v18 = vmul.f32 %v2823_v32, %v1273_v56  ;;  %v1271_v15 = vsel %vm473_vm1, %v1269_v60, %v1270_v36  ;;  %v1278_v6 = vsel %vm480_vm2, %v1276_v46, %v1275_v13 }
  0xee   : > { %v1260_v55 = vadd.f32 %v1258_v30, %v1256_v54  ;;  %v1301_v23 = vadd.f32 %v1299_v24, %v1297_v53  ;;  %v1350_v48 = vmul.f32 %v2843_v61, %v1277_v57  ;;  %v1294_v11 = vadd.f32 %v1292_v12, %v3035_v62 }
  0xef   : > { %v1296_v3 = vmul.f32 %v2848_v34, %v3007_v35  ;;  %v1280_v43 = vsel %vm459_vm3, %v1278_v6, 0.0  ;;  %v1304_v45 = vmul.f32 %v2863_v37, %v1271_v15  ;;  %v1308_v26 = vmul.f32 %v2856_v59, %v1634_v5 }
  0xf0   : > { %v1262_v33 = vadd.f32 %v2916_v58, %v1260_v55  ;;  %v1305_v16 = vadd.f32 %v1303_v31, %v1301_v23  ;;  %v1312_v4 = vmul.f32 %v2866_v40, %v1280_v43  ;;  %v1343_v62 = vmul.f32 %v2823_v32, %v1271_v15 }
  0xf1   : > { %v1298_v24 = vadd.f32 %v1296_v3, %v1294_v11  ;;  %v469_v44 = vmul.f32 0.0, %v467_v9  ;;  %v470_v35 = vmul.f32 0.0, %v468_v28  ;;  %v1344_v47 = vadd.f32 %v1342_v18, %v1340_v21 }
  0xf2   : > { %1632 = vst [vmem:[%s2345_s26 + $0xd8] sm:$0xff] %v1262_v33  ;;  %v1346_v20 = vmul.f32 %v2848_v34, %v1633_v19  ;;  %v1309_v29 = vadd.f32 %v1307_v39, %v1305_v16  ;;  %v1345_v7 = vadd.f32 %v1343_v62, %v1341_v49  ;;  %v1347_v0 = vmul.f32 %v2848_v34, %v1634_v5 }
  0xf3   : > { %v1302_v38 = vadd.f32 %v1300_v22, %v1298_v24  ;;  %v1320_v30 = vrot.slane %v469_v44, 7  ;;  %v1321_v12 = vrot.slane %v470_v35, 7  ;;  %v1326_v17 = vrot.slane %v469_v44, 1 }
  0xf4   : > { %v1327_v52 = vrot.slane %v470_v35, 1  ;;  %v1313_v25 = vadd.f32 %v1311_v63, %v1309_v29  ;;  %v1351_v32 = vmul.f32 %v2843_v61, %v1280_v43  ;;  %v1348_v8 = vadd.f32 %v1346_v20, %v1344_v47 }
  0xf5   : > { %v1306_v51 = vadd.f32 %v1304_v45, %v1302_v38  ;;  %v1323_v21 = vsel %vm473_vm1, %v1321_v12, %v1320_v30  ;;  %v1322_v34 = vsel %vm473_vm1, %v1320_v30, %v1321_v12  ;;  %v1358_v42 = vmul.f32 %v2856_v59, %v469_v44 }
  0xf6   : > { %v1328_v19 = vsel %vm480_vm2, %v1326_v17, %v1327_v52  ;;  %v1329_v5 = vsel %vm480_vm2, %v1327_v52, %v1326_v17  ;;  %v1315_v60 = vadd.f32 %v2916_v58, %v1313_v25  ;;  %v1324_v13 = vsel %vm456_vm0, %v1323_v21, 0.0 }
  0xf7   : > { %v1310_v36 = vadd.f32 %v1308_v26, %v1306_v51  ;;  %v1352_v61 = vadd.f32 %v1350_v48, %v1348_v8  ;;  %v1354_v10 = vmul.f32 %v2863_v37, %v1324_v13  ;;  %v1349_v46 = vadd.f32 %v1347_v0, %v1345_v7 }
  0xf8   : > { %1635 = vst [vmem:[%s2345_s26 + $0xe0] sm:$0xff] %v1315_v60  ;;  %v1331_v14 = vsel %vm459_vm3, %v1329_v5, 0.0  ;;  %v1355_v22 = vmul.f32 %v2863_v37, %v1322_v34  ;;  %v1362_v1 = vmul.f32 %v2866_v40, %v1328_v19  ;;  %v1359_v54 = vmul.f32 %v2856_v59, %v470_v35 }
  0xf9   : > { %v1314_v27 = vadd.f32 %v1312_v4, %v1310_v36  ;;  %v1356_v50 = vadd.f32 %v1354_v10, %v1352_v61  ;;  %v1353_v41 = vadd.f32 %v1351_v32, %v1349_v46  ;;  %v1363_v39 = vmul.f32 %v2866_v40, %v1331_v14 }
  0xfb   : > { %v1316_v56 = vadd.f32 %v2916_v58, %v1314_v27  ;;  %v1360_v57 = vadd.f32 %v1358_v42, %v1356_v50  ;;  %v1357_v2 = vadd.f32 %v1355_v22, %v1353_v41 }
  0xfd   : > { %1636 = vst [vmem:[%s2345_s26 + $0xe8] sm:$0xff] %v1316_v56  ;;  %v1364_v37 = vadd.f32 %v1362_v1, %v1360_v57  ;;  %v1361_v49 = vadd.f32 %v1359_v54, %v1357_v2 }
  0xff   : > { %v1366_v59 = vadd.f32 %v2916_v58, %v1364_v37  ;;  %v1365_v53 = vadd.f32 %v1363_v39, %v1361_v49 }
 0x101   : > { %1637 = vst [vmem:[%s2345_s26 + $0xf0] sm:$0xff] %v1366_v59  ;;  %v1367_v31 = vadd.f32 %v2916_v58, %v1365_v53 }
 0x103   : > { %1638 = vst [vmem:[%s2345_s26 + $0xf8] sm:$0xff] %v1367_v31 }
 0x104   : > { %1904 = shalt.err (!%p1901_p13)
}
 0x105   : > { %s1972_s27 = smov 128   ;;  %s1973_s29 = smov 8  }
 0x106   : > { %1660 = dma.vmem_to_hbm [thread:$0]  (%p2096_p0), %s1389_s6, 4096, %s1391_s1, %s1372_s16, %s1972_s27, %s1972_s27, %s1973_s29  }
 0x107 PF: > { %s1405_s30 = sand.u32 1, %s1947_s18   ;;  %p1677_p3 = pnand %p1563_p4, %p2100_p2 }
 0x108   : > { %s1406_s14 = scalar_lea.sflag [#allocation4], %s1405_s30 }
 0x109   : > { %p1678_p5 = pneg %p1677_p3 }
 0x10b   : > { %1942 = dma.done.wait (%p1678_p5), %s1406_s14, 4096  }
 0x10c   : > { %1944 = vsyncadd (%p1678_p5), %s1406_s14, 4294963200  ;;  %s25_s23 = sadd.s32 1, %s1967_s23   ;;  %s3203_s17 = sld [smem:[#allocation15_spill]] }
 0x10d   : > { %p22_p1 = scmp.ge.s32.totalorder %s25_s23, 4   ;;  %s3204_s20 = sld [smem:[#allocation18_spill]] }
 0x10e   : > { %s3205_s21 = sld [smem:[#allocation16_spill]]  ;;  %s3207_s18 = smov %s1951_s19 }
 0x10f   : > { %s3206_s22 = sld [smem:[#allocation17_spill]]  ;;  %24 = sbr.rel (!%p22_p1) target bundleno = 13 (0xd), region = 147 }
 0x112   : > { %s3208_s19 = smov %s3203_s17 }
 0x114   :  { %1412 = vsyncpa [#allocation3], 1 }
 0x115   :  { %1414 = vsyncpa [#allocation3 + $0x1], 1 }
 0x116   :  { %1415 = vsyncpa [#allocation6], 1 }
 0x117   :  { %1417 = vsyncpa [#allocation6 + $0x1], 1 }
 0x118   :  { %1418 = vsyncpa [#allocation9], 1 }
 0x119   :  { %1419 = vsyncpa [#allocation4], 1 }
 0x11a   :  { %1421 = vsyncpa [#allocation4 + $0x1], 1 }

</bundles_post_ra>
